<compile_context>
chip_gen: v7x
topology: tpu7x:2x2x1
jax: 0.10.0
libtpu: 0.0.40
codegen_flags: <defaults>
</compile_context>

<pallas_src>
import functools

import jax
import jax.numpy as jnp
from jax.experimental import pallas as pl
from jax.experimental.pallas import tpu as pltpu


def _moe_attention_kernel(x_ref, noise_ref,
                          gw1_ref, gsc_ref, gsh_ref, gw2_ref, gb2_ref,
                          ew1_ref, esc_ref, esh_ref, ew2bd_ref, eb2_ref,
                          out_ref, *, tile_h, width, chans, num_experts,
                          inv_temp):
    """Grid = (batch, row_tile).

    x_ref     : [H+2, W+2, C]   zero-padded NHWC image (bf16), resident per batch
    noise_ref : [TILE_H*W, E]   pre-scaled gaussian noise (bf16)
    gw1_ref   : [9, C, C]       gate 3x3 conv, tap-major (bf16)
    gsc_ref   : [1, C]          gate BN folded scale (f32)
    gsh_ref   : [1, C]          gate BN folded shift (f32)
    gw2_ref   : [C, E]          gate 1x1 conv (bf16)
    gb2_ref   : [1, E]          gate 1x1 conv bias (f32)
    ew1_ref   : [9, C, E*Hd]    all experts' 3x3 convs fused along N (bf16)
    esc_ref   : [1, E*Hd]       expert BN folded scales (f32)
    esh_ref   : [1, E*Hd]       expert BN folded shifts (f32)
    ew2bd_ref : [E*Hd, E]       block-diagonal expert 1x1 convs (bf16)
    eb2_ref   : [1, E]          expert 1x1 conv biases (f32)
    out_ref   : [TILE_H, W]     routed mask tile (f32)
    """
    tile_hw = tile_h * width

    row0 = pl.program_id(1) * tile_h
    if tile_h % 8 == 0:
        row0 = pl.multiple_of(row0, 8)

    # Rows needed for this tile's 3x3 conv, including the 1-row halo.
    rows = x_ref[pl.ds(row0, tile_h + 2), :, :]          # [tile_h+2, W+2, C]

    # In-kernel im2col: 9 shifted views, one matmul per tap, f32 accumulation.
    g_acc = None   # gate conv3x3   -> [tile_hw, C]
    h_acc = None   # expert conv3x3 -> [tile_hw, E*Hd]  (all experts fused)
    for k in range(9):
        ky, kx = divmod(k, 3)
        view = rows[ky:ky + tile_h, kx:kx + width, :].reshape(tile_hw, chans)
        g_k = jnp.dot(view, gw1_ref[k], preferred_element_type=jnp.float32)
        h_k = jnp.dot(view, ew1_ref[k], preferred_element_type=jnp.float32)
        g_acc = g_k if g_acc is None else g_acc + g_k
        h_acc = h_k if h_acc is None else h_acc + h_k

    # ---- gate head: BN(eval) -> ReLU -> 1x1 conv -> /temp -> +noise -> softmax
    g = jnp.maximum(g_acc * gsc_ref[...] + gsh_ref[...], 0.0)
    logits = jnp.dot(g.astype(jnp.bfloat16), gw2_ref[...],
                     preferred_element_type=jnp.float32) + gb2_ref[...]
    logits = logits * inv_temp + noise_ref[...].astype(jnp.float32)
    m = jnp.max(logits, axis=-1, keepdims=True)
    p = jnp.exp(logits - m)
    routing = p * pl.reciprocal(jnp.sum(p, axis=-1, keepdims=True), approx=True)

    # ---- experts (fused): BN(eval) -> ReLU -> block-diag 1x1 conv -> routed sum
    h = jnp.maximum(h_acc * esc_ref[...] + esh_ref[...], 0.0)
    expert_outs = jnp.dot(h.astype(jnp.bfloat16), ew2bd_ref[...],
                          preferred_element_type=jnp.float32) + eb2_ref[...]
    masked = expert_outs * routing                              # [tile_hw, E]
    out_ref[...] = jnp.sum(masked.reshape(tile_h, width, num_experts), axis=-1)


def _pick_tile_h(H, W, target_hw):
    """Largest divisor of H whose tile satisfies TPU blocking rules."""
    cands = []
    for d in range(1, H + 1):
        if H % d:
            continue
        ok_shape = (d == H) or (d % 8 == 0 and (d * W) % 8 == 0)
        if ok_shape and d * W <= target_hw:
            cands.append(d)
    return max(cands) if cands else H


def _const_spec(arr):
    zeros = (0,) * arr.ndim
    return pl.BlockSpec(arr.shape, lambda b, t: zeros)


def moe_attention_forward(x_nchw, params, noise, *, temp=1.0,
                          tile_hw_target=2048):
    """x_nchw: [B, C, H, W], noise: [B, H*W, E]  ->  mask: [B, 1, H, W]."""
    B, C, H, W = x_nchw.shape
    E = params["gb2"].shape[1]
    Hp, Wp = H + 2, W + 2

    # NCHW -> NHWC, zero pad by 1 (conv padding=1); bf16 matmul operands.
    x = jnp.transpose(x_nchw, (0, 2, 3, 1)).astype(jnp.bfloat16)
    x_pad = jnp.pad(x, ((0, 0), (1, 1), (1, 1), (0, 0)))
    noise = noise.astype(jnp.bfloat16)

    tile_h = _pick_tile_h(H, W, tile_hw_target)
    num_tiles = H // tile_h
    tile_hw = tile_h * W

    weights = (params["gw1"].astype(jnp.bfloat16),
               params["gscale"], params["gshift"],
               params["gw2"].astype(jnp.bfloat16), params["gb2"],
               params["ew1"].astype(jnp.bfloat16),
               params["escale"], params["eshift"],
               params["ew2_bd"].astype(jnp.bfloat16), params["eb2"])

    kernel = functools.partial(_moe_attention_kernel,
                               tile_h=tile_h, width=W, chans=C,
                               num_experts=E, inv_temp=1.0 / float(temp))

    # Rough per-step VMEM budget (resident image + pipelined tiles + weights),
    # with headroom; clamped so v7x's 64 MiB physical VMEM stays comfortable.
    bytes_per_step = (Hp * Wp * C * 2            # resident padded image (bf16)
                      + tile_hw * E * 2          # noise tile (bf16)
                      + tile_h * W * 4)          # output tile (f32)
    bytes_per_step += sum(int(w.size) * w.dtype.itemsize for w in weights)
    vmem_limit = int(min(max(4 * bytes_per_step + (4 << 20), 16 << 20), 48 << 20))

    out = pl.pallas_call(
        kernel,
        out_shape=jax.ShapeDtypeStruct((B, H, W), jnp.float32),
        grid=(B, num_tiles),
        in_specs=[
            # Full padded image of batch b, kept resident across row tiles.
            pl.BlockSpec((None, Hp, Wp, C), lambda b, t: (b, 0, 0, 0)),
            # Noise slice for this row tile.
            pl.BlockSpec((None, tile_hw, E), lambda b, t: (b, t, 0)),
        ] + [_const_spec(w) for w in weights],
        out_specs=pl.BlockSpec((None, tile_h, W), lambda b, t: (b, t, 0)),
        compiler_params=pltpu.CompilerParams(
            dimension_semantics=("parallel", "parallel"),
            vmem_limit_bytes=vmem_limit),
    )(x_pad, noise, *weights)

    return out[:, None, :, :]                     # [B, 1, H, W]


def init_params(key, C, E, Hd):
    """Deterministic init mirroring _init_weights: kaiming_normal(fan_out) convs,
    zero biases, eval-mode BN (gamma=1, beta=0, running mean/var = 0/1) folded."""
    eps = 1e-5
    bn_scale = float(1.0 / jnp.sqrt(1.0 + eps))
    keys = jax.random.split(key, 2 + 2 * E)

    def kaiming(k, shape, fan_out):
        return jax.random.normal(k, shape, jnp.float32) * jnp.sqrt(2.0 / fan_out)

    # Gate conv3x3 (C->C, fan_out=C*9), stored tap-major [9, C_in, C_out].
    gw1 = kaiming(keys[0], (9, C, C), C * 9)
    gw2 = kaiming(keys[1], (C, E), E)                          # conv1x1 C->E

    # Expert conv3x3 (C->Hd, fan_out=Hd*9), fused along the output dim.
    ew1 = jnp.stack([kaiming(keys[2 + 2 * e], (9, C, Hd), Hd * 9)
                     for e in range(E)], axis=2)               # [9, C, E, Hd]
    ew1 = ew1.reshape(9, C, E * Hd)

    # Expert conv1x1 (Hd->1, fan_out=1), laid out block-diagonally [E*Hd, E].
    ew2 = jnp.stack([kaiming(keys[3 + 2 * e], (Hd,), 1) for e in range(E)])
    ew2_bd = (ew2[:, :, None] * jnp.eye(E, dtype=jnp.float32)[:, None, :]
              ).reshape(E * Hd, E)

    return {
        "gw1": gw1,                                           # [9, C, C]
        "gscale": jnp.full((1, C), bn_scale, jnp.float32),
        "gshift": jnp.zeros((1, C), jnp.float32),
        "gw2": gw2,                                           # [C, E]
        "gb2": jnp.zeros((1, E), jnp.float32),
        "ew1": ew1,                                           # [9, C, E*Hd]
        "escale": jnp.full((1, E * Hd), bn_scale, jnp.float32),
        "eshift": jnp.zeros((1, E * Hd), jnp.float32),
        "ew2_bd": ew2_bd,                                     # [E*Hd, E]
        "eb2": jnp.zeros((1, E), jnp.float32),
    }


def _reference_forward(x_nchw, params, noise, temp):
    """Pure-JAX reference using the same bf16 operand / f32 accumulation scheme."""
    B, C, H, W = x_nchw.shape
    x = jnp.transpose(x_nchw, (0, 2, 3, 1)).astype(jnp.bfloat16)
    xp = jnp.pad(x, ((0, 0), (1, 1), (1, 1), (0, 0)))
    cols = [xp[:, ky:ky + H, kx:kx + W, :] for ky in range(3) for kx in range(3)]
    patches = jnp.stack(cols, axis=3).reshape(B, H * W, 9, C)   # [B, HW, 9, C]

    gw1 = params["gw1"].astype(jnp.bfloat16)
    ew1 = params["ew1"].astype(jnp.bfloat16)
    g = jnp.einsum("bnkc,kcd->bnd", patches, gw1,
                   preferred_element_type=jnp.float32)
    h = jnp.einsum("bnkc,kcd->bnd", patches, ew1,
                   preferred_element_type=jnp.float32)

    g = jnp.maximum(g * params["gscale"] + params["gshift"], 0.0)
    logits = jnp.einsum("bnc,ce->bne", g.astype(jnp.bfloat16),
                        params["gw2"].astype(jnp.bfloat16),
                        preferred_element_type=jnp.float32) + params["gb2"]
    noise_f32 = noise.astype(jnp.bfloat16).astype(jnp.float32)
    logits = logits / temp + noise_f32
    routing = jax.nn.softmax(logits, axis=-1)

    h = jnp.maximum(h * params["escale"] + params["eshift"], 0.0)
    eo = jnp.einsum("bnd,de->bne", h.astype(jnp.bfloat16),
                    params["ew2_bd"].astype(jnp.bfloat16),
                    preferred_element_type=jnp.float32) + params["eb2"]
    return jnp.sum(eo * routing, axis=-1).reshape(B, 1, H, W)


if __name__ == "__main__":
    B, C, H, W = 2, 4, 16, 16       # x: [B, C, H, W]
    E, Hd = 4, 8                    # num_experts, hidden_dim
    TEMP = 1.0

    key = jax.random.PRNGKey(0)
    k_x, k_n, k_p = jax.random.split(key, 3)

    x = jax.random.normal(k_x, (B, C, H, W), jnp.float32)
    params = init_params(k_p, C, E, Hd)
    # torch.randn_like(gate_logits) * 0.01 -> generated host-side, passed in.
    noise = jax.random.normal(k_n, (B, H * W, E), jnp.float32) * 0.01

    # Small tile target so the multi-tile (halo) path is exercised at H=16.
    mask = moe_attention_forward(x, params, noise, temp=TEMP, tile_hw_target=128)
    mask = jax.block_until_ready(mask)

    assert mask.shape == (B, 1, H, W), mask.shape
    assert bool(jnp.all(jnp.isfinite(mask)))

    ref = _reference_forward(x, params, noise, TEMP)
    err = float(jnp.max(jnp.abs(mask - ref)))
    tol = 0.03 * (1.0 + float(jnp.max(jnp.abs(ref))))
    assert err <= tol, f"kernel vs reference mismatch: {err} > {tol}"

    print("KERNEL_OK")
</pallas_src>

<mosaic_0001>
module attributes {stable_mosaic.version = 11 : i64} {
  func.func @_moe_attention_kernel(%arg0: i32, %arg1: i32, %arg2: memref<1x18x18x4xbf16, #tpu.memory_space<vmem>>, %arg3: memref<1x128x4xbf16, #tpu.memory_space<vmem>>, %arg4: memref<9x4x4xbf16, #tpu.memory_space<vmem>>, %arg5: memref<1x4xf32, #tpu.memory_space<vmem>>, %arg6: memref<1x4xf32, #tpu.memory_space<vmem>>, %arg7: memref<4x4xbf16, #tpu.memory_space<vmem>>, %arg8: memref<1x4xf32, #tpu.memory_space<vmem>>, %arg9: memref<9x4x32xbf16, #tpu.memory_space<vmem>>, %arg10: memref<1x32xf32, #tpu.memory_space<vmem>>, %arg11: memref<1x32xf32, #tpu.memory_space<vmem>>, %arg12: memref<32x4xbf16, #tpu.memory_space<vmem>>, %arg13: memref<1x4xf32, #tpu.memory_space<vmem>>, %arg14: memref<1x8x16xf32, #tpu.memory_space<vmem>>) attributes {dimension_semantics = [#tpu.dimension_semantics<parallel>, #tpu.dimension_semantics<parallel>], iteration_bounds = array<i64: 2, 2>, scalar_prefetch = 0 : i64, scratch_operands = 0 : i64, tpu.core_type = #tpu.core_type<tc>, window_params = [{transform_indices = @transform_0, window_bounds = array<i64: 1, 18, 18, 4>}, {transform_indices = @transform_1, window_bounds = array<i64: 1, 128, 4>}, {pipeline_mode = #tpu.pipeline_mode<synchronous>, transform_indices = @transform_2, window_bounds = array<i64: 9, 4, 4>}, {pipeline_mode = #tpu.pipeline_mode<synchronous>, transform_indices = @transform_3, window_bounds = array<i64: 1, 4>}, {pipeline_mode = #tpu.pipeline_mode<synchronous>, transform_indices = @transform_4, window_bounds = array<i64: 1, 4>}, {pipeline_mode = #tpu.pipeline_mode<synchronous>, transform_indices = @transform_5, window_bounds = array<i64: 4, 4>}, {pipeline_mode = #tpu.pipeline_mode<synchronous>, transform_indices = @transform_6, window_bounds = array<i64: 1, 4>}, {pipeline_mode = #tpu.pipeline_mode<synchronous>, transform_indices = @transform_7, window_bounds = array<i64: 9, 4, 32>}, {pipeline_mode = #tpu.pipeline_mode<synchronous>, transform_indices = @transform_8, window_bounds = array<i64: 1, 32>}, {pipeline_mode = #tpu.pipeline_mode<synchronous>, transform_indices = @transform_9, window_bounds = array<i64: 1, 32>}, {pipeline_mode = #tpu.pipeline_mode<synchronous>, transform_indices = @transform_10, window_bounds = array<i64: 32, 4>}, {pipeline_mode = #tpu.pipeline_mode<synchronous>, transform_indices = @transform_11, window_bounds = array<i64: 1, 4>}, {transform_indices = @transform_12, window_bounds = array<i64: 1, 8, 16>}]} {
    %c8_i32 = arith.constant 8 : i32
    %0 = arith.muli %arg1, %c8_i32 : i32
    %1 = tpu.assume_multiple %0, 8 : i32
    %c0 = arith.constant 0 : index
    %2 = arith.index_cast %1 : i32 to index
    %c0_0 = arith.constant 0 : index
    %c0_1 = arith.constant 0 : index
    %3 = vector.load %arg2[%c0, %2, %c0_0, %c0_1] : memref<1x18x18x4xbf16, #tpu.memory_space<vmem>>, vector<1x10x18x4xbf16>
    %4 = vector.shape_cast %3 : vector<1x10x18x4xbf16> to vector<10x18x4xbf16>
    %5 = vector.extract_strided_slice %4 {offsets = [0, 0, 0], sizes = [8, 16, 4], strides = [1, 1, 1]} : vector<10x18x4xbf16> to vector<8x16x4xbf16>
    %6 = vector.shape_cast %5 : vector<8x16x4xbf16> to vector<128x4xbf16>
    %c0_2 = arith.constant 0 : index
    %c0_3 = arith.constant 0 : index
    %c0_4 = arith.constant 0 : index
    %7 = vector.load %arg4[%c0_2, %c0_3, %c0_4] : memref<9x4x4xbf16, #tpu.memory_space<vmem>>, vector<1x4x4xbf16>
    %8 = vector.shape_cast %7 : vector<1x4x4xbf16> to vector<4x4xbf16>
    %cst = arith.constant dense<0.000000e+00> : vector<128x4xf32>
    %9 = tpu.matmul %6, %8, %cst {dimension_numbers = #tpu.dot_dimension_numbers<[1], [0], [0], [1], [0, 0, 1, 1], [], []>} : vector<128x4xbf16>, vector<4x4xbf16>, vector<128x4xf32> -> vector<128x4xf32>
    %c0_5 = arith.constant 0 : index
    %c0_6 = arith.constant 0 : index
    %c0_7 = arith.constant 0 : index
    %10 = vector.load %arg9[%c0_5, %c0_6, %c0_7] : memref<9x4x32xbf16, #tpu.memory_space<vmem>>, vector<1x4x32xbf16>
    %11 = vector.shape_cast %10 : vector<1x4x32xbf16> to vector<4x32xbf16>
    %cst_8 = arith.constant dense<0.000000e+00> : vector<128x32xf32>
    %12 = tpu.matmul %6, %11, %cst_8 {dimension_numbers = #tpu.dot_dimension_numbers<[1], [0], [0], [1], [0, 0, 1, 1], [], []>} : vector<128x4xbf16>, vector<4x32xbf16>, vector<128x32xf32> -> vector<128x32xf32>
    %13 = vector.extract_strided_slice %4 {offsets = [0, 1, 0], sizes = [8, 16, 4], strides = [1, 1, 1]} : vector<10x18x4xbf16> to vector<8x16x4xbf16>
    %14 = vector.shape_cast %13 : vector<8x16x4xbf16> to vector<128x4xbf16>
    %c1 = arith.constant 1 : index
    %c0_9 = arith.constant 0 : index
    %c0_10 = arith.constant 0 : index
    %15 = vector.load %arg4[%c1, %c0_9, %c0_10] : memref<9x4x4xbf16, #tpu.memory_space<vmem>>, vector<1x4x4xbf16>
    %16 = vector.shape_cast %15 : vector<1x4x4xbf16> to vector<4x4xbf16>
    %cst_11 = arith.constant dense<0.000000e+00> : vector<128x4xf32>
    %17 = tpu.matmul %14, %16, %cst_11 {dimension_numbers = #tpu.dot_dimension_numbers<[1], [0], [0], [1], [0, 0, 1, 1], [], []>} : vector<128x4xbf16>, vector<4x4xbf16>, vector<128x4xf32> -> vector<128x4xf32>
    %c1_12 = arith.constant 1 : index
    %c0_13 = arith.constant 0 : index
    %c0_14 = arith.constant 0 : index
    %18 = vector.load %arg9[%c1_12, %c0_13, %c0_14] : memref<9x4x32xbf16, #tpu.memory_space<vmem>>, vector<1x4x32xbf16>
    %19 = vector.shape_cast %18 : vector<1x4x32xbf16> to vector<4x32xbf16>
    %cst_15 = arith.constant dense<0.000000e+00> : vector<128x32xf32>
    %20 = tpu.matmul %14, %19, %cst_15 {dimension_numbers = #tpu.dot_dimension_numbers<[1], [0], [0], [1], [0, 0, 1, 1], [], []>} : vector<128x4xbf16>, vector<4x32xbf16>, vector<128x32xf32> -> vector<128x32xf32>
    %21 = arith.addf %9, %17 : vector<128x4xf32>
    %22 = arith.addf %12, %20 : vector<128x32xf32>
    %23 = vector.extract_strided_slice %4 {offsets = [0, 2, 0], sizes = [8, 16, 4], strides = [1, 1, 1]} : vector<10x18x4xbf16> to vector<8x16x4xbf16>
    %24 = vector.shape_cast %23 : vector<8x16x4xbf16> to vector<128x4xbf16>
    %c2 = arith.constant 2 : index
    %c0_16 = arith.constant 0 : index
    %c0_17 = arith.constant 0 : index
    %25 = vector.load %arg4[%c2, %c0_16, %c0_17] : memref<9x4x4xbf16, #tpu.memory_space<vmem>>, vector<1x4x4xbf16>
    %26 = vector.shape_cast %25 : vector<1x4x4xbf16> to vector<4x4xbf16>
    %cst_18 = arith.constant dense<0.000000e+00> : vector<128x4xf32>
    %27 = tpu.matmul %24, %26, %cst_18 {dimension_numbers = #tpu.dot_dimension_numbers<[1], [0], [0], [1], [0, 0, 1, 1], [], []>} : vector<128x4xbf16>, vector<4x4xbf16>, vector<128x4xf32> -> vector<128x4xf32>
    %c2_19 = arith.constant 2 : index
    %c0_20 = arith.constant 0 : index
    %c0_21 = arith.constant 0 : index
    %28 = vector.load %arg9[%c2_19, %c0_20, %c0_21] : memref<9x4x32xbf16, #tpu.memory_space<vmem>>, vector<1x4x32xbf16>
    %29 = vector.shape_cast %28 : vector<1x4x32xbf16> to vector<4x32xbf16>
    %cst_22 = arith.constant dense<0.000000e+00> : vector<128x32xf32>
    %30 = tpu.matmul %24, %29, %cst_22 {dimension_numbers = #tpu.dot_dimension_numbers<[1], [0], [0], [1], [0, 0, 1, 1], [], []>} : vector<128x4xbf16>, vector<4x32xbf16>, vector<128x32xf32> -> vector<128x32xf32>
    %31 = arith.addf %21, %27 : vector<128x4xf32>
    %32 = arith.addf %22, %30 : vector<128x32xf32>
    %33 = vector.extract_strided_slice %4 {offsets = [1, 0, 0], sizes = [8, 16, 4], strides = [1, 1, 1]} : vector<10x18x4xbf16> to vector<8x16x4xbf16>
    %34 = vector.shape_cast %33 : vector<8x16x4xbf16> to vector<128x4xbf16>
    %c3 = arith.constant 3 : index
    %c0_23 = arith.constant 0 : index
    %c0_24 = arith.constant 0 : index
    %35 = vector.load %arg4[%c3, %c0_23, %c0_24] : memref<9x4x4xbf16, #tpu.memory_space<vmem>>, vector<1x4x4xbf16>
    %36 = vector.shape_cast %35 : vector<1x4x4xbf16> to vector<4x4xbf16>
    %cst_25 = arith.constant dense<0.000000e+00> : vector<128x4xf32>
    %37 = tpu.matmul %34, %36, %cst_25 {dimension_numbers = #tpu.dot_dimension_numbers<[1], [0], [0], [1], [0, 0, 1, 1], [], []>} : vector<128x4xbf16>, vector<4x4xbf16>, vector<128x4xf32> -> vector<128x4xf32>
    %c3_26 = arith.constant 3 : index
    %c0_27 = arith.constant 0 : index
    %c0_28 = arith.constant 0 : index
    %38 = vector.load %arg9[%c3_26, %c0_27, %c0_28] : memref<9x4x32xbf16, #tpu.memory_space<vmem>>, vector<1x4x32xbf16>
    %39 = vector.shape_cast %38 : vector<1x4x32xbf16> to vector<4x32xbf16>
    %cst_29 = arith.constant dense<0.000000e+00> : vector<128x32xf32>
    %40 = tpu.matmul %34, %39, %cst_29 {dimension_numbers = #tpu.dot_dimension_numbers<[1], [0], [0], [1], [0, 0, 1, 1], [], []>} : vector<128x4xbf16>, vector<4x32xbf16>, vector<128x32xf32> -> vector<128x32xf32>
    %41 = arith.addf %31, %37 : vector<128x4xf32>
    %42 = arith.addf %32, %40 : vector<128x32xf32>
    %43 = vector.extract_strided_slice %4 {offsets = [1, 1, 0], sizes = [8, 16, 4], strides = [1, 1, 1]} : vector<10x18x4xbf16> to vector<8x16x4xbf16>
    %44 = vector.shape_cast %43 : vector<8x16x4xbf16> to vector<128x4xbf16>
    %c4 = arith.constant 4 : index
    %c0_30 = arith.constant 0 : index
    %c0_31 = arith.constant 0 : index
    %45 = vector.load %arg4[%c4, %c0_30, %c0_31] : memref<9x4x4xbf16, #tpu.memory_space<vmem>>, vector<1x4x4xbf16>
    %46 = vector.shape_cast %45 : vector<1x4x4xbf16> to vector<4x4xbf16>
    %cst_32 = arith.constant dense<0.000000e+00> : vector<128x4xf32>
    %47 = tpu.matmul %44, %46, %cst_32 {dimension_numbers = #tpu.dot_dimension_numbers<[1], [0], [0], [1], [0, 0, 1, 1], [], []>} : vector<128x4xbf16>, vector<4x4xbf16>, vector<128x4xf32> -> vector<128x4xf32>
    %c4_33 = arith.constant 4 : index
    %c0_34 = arith.constant 0 : index
    %c0_35 = arith.constant 0 : index
    %48 = vector.load %arg9[%c4_33, %c0_34, %c0_35] : memref<9x4x32xbf16, #tpu.memory_space<vmem>>, vector<1x4x32xbf16>
    %49 = vector.shape_cast %48 : vector<1x4x32xbf16> to vector<4x32xbf16>
    %cst_36 = arith.constant dense<0.000000e+00> : vector<128x32xf32>
    %50 = tpu.matmul %44, %49, %cst_36 {dimension_numbers = #tpu.dot_dimension_numbers<[1], [0], [0], [1], [0, 0, 1, 1], [], []>} : vector<128x4xbf16>, vector<4x32xbf16>, vector<128x32xf32> -> vector<128x32xf32>
    %51 = arith.addf %41, %47 : vector<128x4xf32>
    %52 = arith.addf %42, %50 : vector<128x32xf32>
    %53 = vector.extract_strided_slice %4 {offsets = [1, 2, 0], sizes = [8, 16, 4], strides = [1, 1, 1]} : vector<10x18x4xbf16> to vector<8x16x4xbf16>
    %54 = vector.shape_cast %53 : vector<8x16x4xbf16> to vector<128x4xbf16>
    %c5 = arith.constant 5 : index
    %c0_37 = arith.constant 0 : index
    %c0_38 = arith.constant 0 : index
    %55 = vector.load %arg4[%c5, %c0_37, %c0_38] : memref<9x4x4xbf16, #tpu.memory_space<vmem>>, vector<1x4x4xbf16>
    %56 = vector.shape_cast %55 : vector<1x4x4xbf16> to vector<4x4xbf16>
    %cst_39 = arith.constant dense<0.000000e+00> : vector<128x4xf32>
    %57 = tpu.matmul %54, %56, %cst_39 {dimension_numbers = #tpu.dot_dimension_numbers<[1], [0], [0], [1], [0, 0, 1, 1], [], []>} : vector<128x4xbf16>, vector<4x4xbf16>, vector<128x4xf32> -> vector<128x4xf32>
    %c5_40 = arith.constant 5 : index
    %c0_41 = arith.constant 0 : index
    %c0_42 = arith.constant 0 : index
    %58 = vector.load %arg9[%c5_40, %c0_41, %c0_42] : memref<9x4x32xbf16, #tpu.memory_space<vmem>>, vector<1x4x32xbf16>
    %59 = vector.shape_cast %58 : vector<1x4x32xbf16> to vector<4x32xbf16>
    %cst_43 = arith.constant dense<0.000000e+00> : vector<128x32xf32>
    %60 = tpu.matmul %54, %59, %cst_43 {dimension_numbers = #tpu.dot_dimension_numbers<[1], [0], [0], [1], [0, 0, 1, 1], [], []>} : vector<128x4xbf16>, vector<4x32xbf16>, vector<128x32xf32> -> vector<128x32xf32>
    %61 = arith.addf %51, %57 : vector<128x4xf32>
    %62 = arith.addf %52, %60 : vector<128x32xf32>
    %63 = vector.extract_strided_slice %4 {offsets = [2, 0, 0], sizes = [8, 16, 4], strides = [1, 1, 1]} : vector<10x18x4xbf16> to vector<8x16x4xbf16>
    %64 = vector.shape_cast %63 : vector<8x16x4xbf16> to vector<128x4xbf16>
    %c6 = arith.constant 6 : index
    %c0_44 = arith.constant 0 : index
    %c0_45 = arith.constant 0 : index
    %65 = vector.load %arg4[%c6, %c0_44, %c0_45] : memref<9x4x4xbf16, #tpu.memory_space<vmem>>, vector<1x4x4xbf16>
    %66 = vector.shape_cast %65 : vector<1x4x4xbf16> to vector<4x4xbf16>
    %cst_46 = arith.constant dense<0.000000e+00> : vector<128x4xf32>
    %67 = tpu.matmul %64, %66, %cst_46 {dimension_numbers = #tpu.dot_dimension_numbers<[1], [0], [0], [1], [0, 0, 1, 1], [], []>} : vector<128x4xbf16>, vector<4x4xbf16>, vector<128x4xf32> -> vector<128x4xf32>
    %c6_47 = arith.constant 6 : index
    %c0_48 = arith.constant 0 : index
    %c0_49 = arith.constant 0 : index
    %68 = vector.load %arg9[%c6_47, %c0_48, %c0_49] : memref<9x4x32xbf16, #tpu.memory_space<vmem>>, vector<1x4x32xbf16>
    %69 = vector.shape_cast %68 : vector<1x4x32xbf16> to vector<4x32xbf16>
    %cst_50 = arith.constant dense<0.000000e+00> : vector<128x32xf32>
    %70 = tpu.matmul %64, %69, %cst_50 {dimension_numbers = #tpu.dot_dimension_numbers<[1], [0], [0], [1], [0, 0, 1, 1], [], []>} : vector<128x4xbf16>, vector<4x32xbf16>, vector<128x32xf32> -> vector<128x32xf32>
    %71 = arith.addf %61, %67 : vector<128x4xf32>
    %72 = arith.addf %62, %70 : vector<128x32xf32>
    %73 = vector.extract_strided_slice %4 {offsets = [2, 1, 0], sizes = [8, 16, 4], strides = [1, 1, 1]} : vector<10x18x4xbf16> to vector<8x16x4xbf16>
    %74 = vector.shape_cast %73 : vector<8x16x4xbf16> to vector<128x4xbf16>
    %c7 = arith.constant 7 : index
    %c0_51 = arith.constant 0 : index
    %c0_52 = arith.constant 0 : index
    %75 = vector.load %arg4[%c7, %c0_51, %c0_52] : memref<9x4x4xbf16, #tpu.memory_space<vmem>>, vector<1x4x4xbf16>
    %76 = vector.shape_cast %75 : vector<1x4x4xbf16> to vector<4x4xbf16>
    %cst_53 = arith.constant dense<0.000000e+00> : vector<128x4xf32>
    %77 = tpu.matmul %74, %76, %cst_53 {dimension_numbers = #tpu.dot_dimension_numbers<[1], [0], [0], [1], [0, 0, 1, 1], [], []>} : vector<128x4xbf16>, vector<4x4xbf16>, vector<128x4xf32> -> vector<128x4xf32>
    %c7_54 = arith.constant 7 : index
    %c0_55 = arith.constant 0 : index
    %c0_56 = arith.constant 0 : index
    %78 = vector.load %arg9[%c7_54, %c0_55, %c0_56] : memref<9x4x32xbf16, #tpu.memory_space<vmem>>, vector<1x4x32xbf16>
    %79 = vector.shape_cast %78 : vector<1x4x32xbf16> to vector<4x32xbf16>
    %cst_57 = arith.constant dense<0.000000e+00> : vector<128x32xf32>
    %80 = tpu.matmul %74, %79, %cst_57 {dimension_numbers = #tpu.dot_dimension_numbers<[1], [0], [0], [1], [0, 0, 1, 1], [], []>} : vector<128x4xbf16>, vector<4x32xbf16>, vector<128x32xf32> -> vector<128x32xf32>
    %81 = arith.addf %71, %77 : vector<128x4xf32>
    %82 = arith.addf %72, %80 : vector<128x32xf32>
    %83 = vector.extract_strided_slice %4 {offsets = [2, 2, 0], sizes = [8, 16, 4], strides = [1, 1, 1]} : vector<10x18x4xbf16> to vector<8x16x4xbf16>
    %84 = vector.shape_cast %83 : vector<8x16x4xbf16> to vector<128x4xbf16>
    %c8 = arith.constant 8 : index
    %c0_58 = arith.constant 0 : index
    %c0_59 = arith.constant 0 : index
    %85 = vector.load %arg4[%c8, %c0_58, %c0_59] : memref<9x4x4xbf16, #tpu.memory_space<vmem>>, vector<1x4x4xbf16>
    %86 = vector.shape_cast %85 : vector<1x4x4xbf16> to vector<4x4xbf16>
    %cst_60 = arith.constant dense<0.000000e+00> : vector<128x4xf32>
    %87 = tpu.matmul %84, %86, %cst_60 {dimension_numbers = #tpu.dot_dimension_numbers<[1], [0], [0], [1], [0, 0, 1, 1], [], []>} : vector<128x4xbf16>, vector<4x4xbf16>, vector<128x4xf32> -> vector<128x4xf32>
    %c8_61 = arith.constant 8 : index
    %c0_62 = arith.constant 0 : index
    %c0_63 = arith.constant 0 : index
    %88 = vector.load %arg9[%c8_61, %c0_62, %c0_63] : memref<9x4x32xbf16, #tpu.memory_space<vmem>>, vector<1x4x32xbf16>
    %89 = vector.shape_cast %88 : vector<1x4x32xbf16> to vector<4x32xbf16>
    %cst_64 = arith.constant dense<0.000000e+00> : vector<128x32xf32>
    %90 = tpu.matmul %84, %89, %cst_64 {dimension_numbers = #tpu.dot_dimension_numbers<[1], [0], [0], [1], [0, 0, 1, 1], [], []>} : vector<128x4xbf16>, vector<4x32xbf16>, vector<128x32xf32> -> vector<128x32xf32>
    %91 = arith.addf %81, %87 : vector<128x4xf32>
    %92 = arith.addf %82, %90 : vector<128x32xf32>
    %c0_65 = arith.constant 0 : index
    %c0_66 = arith.constant 0 : index
    %93 = vector.load %arg5[%c0_65, %c0_66] : memref<1x4xf32, #tpu.memory_space<vmem>>, vector<1x4xf32>
    %94 = vector.broadcast %93 : vector<1x4xf32> to vector<128x4xf32>
    %95 = arith.mulf %91, %94 : vector<128x4xf32>
    %c0_67 = arith.constant 0 : index
    %c0_68 = arith.constant 0 : index
    %96 = vector.load %arg6[%c0_67, %c0_68] : memref<1x4xf32, #tpu.memory_space<vmem>>, vector<1x4xf32>
    %97 = vector.broadcast %96 : vector<1x4xf32> to vector<128x4xf32>
    %98 = arith.addf %95, %97 : vector<128x4xf32>
    %cst_69 = arith.constant 0.000000e+00 : f32
    %99 = vector.broadcast %cst_69 : f32 to vector<128x4xf32>
    %100 = arith.maximumf %98, %99 : vector<128x4xf32>
    %101 = arith.truncf %100 : vector<128x4xf32> to vector<128x4xbf16>
    %c0_70 = arith.constant 0 : index
    %c0_71 = arith.constant 0 : index
    %102 = vector.load %arg7[%c0_70, %c0_71] : memref<4x4xbf16, #tpu.memory_space<vmem>>, vector<4x4xbf16>
    %cst_72 = arith.constant dense<0.000000e+00> : vector<128x4xf32>
    %103 = tpu.matmul %101, %102, %cst_72 {dimension_numbers = #tpu.dot_dimension_numbers<[1], [0], [0], [1], [0, 0, 1, 1], [], []>} : vector<128x4xbf16>, vector<4x4xbf16>, vector<128x4xf32> -> vector<128x4xf32>
    %c0_73 = arith.constant 0 : index
    %c0_74 = arith.constant 0 : index
    %104 = vector.load %arg8[%c0_73, %c0_74] : memref<1x4xf32, #tpu.memory_space<vmem>>, vector<1x4xf32>
    %105 = vector.broadcast %104 : vector<1x4xf32> to vector<128x4xf32>
    %106 = arith.addf %103, %105 : vector<128x4xf32>
    %cst_75 = arith.constant 1.000000e+00 : f32
    %107 = vector.broadcast %cst_75 : f32 to vector<128x4xf32>
    %108 = arith.mulf %106, %107 : vector<128x4xf32>
    %c0_76 = arith.constant 0 : index
    %c0_77 = arith.constant 0 : index
    %c0_78 = arith.constant 0 : index
    %109 = vector.load %arg3[%c0_76, %c0_77, %c0_78] : memref<1x128x4xbf16, #tpu.memory_space<vmem>>, vector<1x128x4xbf16>
    %110 = vector.shape_cast %109 : vector<1x128x4xbf16> to vector<128x4xbf16>
    %111 = arith.extf %110 : vector<128x4xbf16> to vector<128x4xf32>
    %112 = arith.addf %108, %111 : vector<128x4xf32>
    %cst_79 = arith.constant dense<0xFF800000> : vector<128xf32>
    %113 = vector.multi_reduction <maximumf>, %112, %cst_79 [1] : vector<128x4xf32> to vector<128xf32>
    %114 = vector.shape_cast %113 : vector<128xf32> to vector<128x1xf32>
    %115 = vector.broadcast %114 : vector<128x1xf32> to vector<128x4xf32>
    %116 = arith.subf %112, %115 : vector<128x4xf32>
    %117 = math.exp %116 : vector<128x4xf32>
    %cst_80 = arith.constant dense<0.000000e+00> : vector<128xf32>
    %118 = vector.multi_reduction <add>, %117, %cst_80 [1] : vector<128x4xf32> to vector<128xf32>
    %119 = vector.shape_cast %118 : vector<128xf32> to vector<128x1xf32>
    %120 = tpu.reciprocal %119 {approx = true} : vector<128x1xf32> -> vector<128x1xf32>
    %121 = vector.broadcast %120 : vector<128x1xf32> to vector<128x4xf32>
    %122 = arith.mulf %117, %121 : vector<128x4xf32>
    %c0_81 = arith.constant 0 : index
    %c0_82 = arith.constant 0 : index
    %123 = vector.load %arg10[%c0_81, %c0_82] : memref<1x32xf32, #tpu.memory_space<vmem>>, vector<1x32xf32>
    %124 = vector.broadcast %123 : vector<1x32xf32> to vector<128x32xf32>
    %125 = arith.mulf %92, %124 : vector<128x32xf32>
    %c0_83 = arith.constant 0 : index
    %c0_84 = arith.constant 0 : index
    %126 = vector.load %arg11[%c0_83, %c0_84] : memref<1x32xf32, #tpu.memory_space<vmem>>, vector<1x32xf32>
    %127 = vector.broadcast %126 : vector<1x32xf32> to vector<128x32xf32>
    %128 = arith.addf %125, %127 : vector<128x32xf32>
    %cst_85 = arith.constant 0.000000e+00 : f32
    %129 = vector.broadcast %cst_85 : f32 to vector<128x32xf32>
    %130 = arith.maximumf %128, %129 : vector<128x32xf32>
    %131 = arith.truncf %130 : vector<128x32xf32> to vector<128x32xbf16>
    %c0_86 = arith.constant 0 : index
    %c0_87 = arith.constant 0 : index
    %132 = vector.load %arg12[%c0_86, %c0_87] : memref<32x4xbf16, #tpu.memory_space<vmem>>, vector<32x4xbf16>
    %cst_88 = arith.constant dense<0.000000e+00> : vector<128x4xf32>
    %133 = tpu.matmul %131, %132, %cst_88 {dimension_numbers = #tpu.dot_dimension_numbers<[1], [0], [0], [1], [0, 0, 1, 1], [], []>} : vector<128x32xbf16>, vector<32x4xbf16>, vector<128x4xf32> -> vector<128x4xf32>
    %c0_89 = arith.constant 0 : index
    %c0_90 = arith.constant 0 : index
    %134 = vector.load %arg13[%c0_89, %c0_90] : memref<1x4xf32, #tpu.memory_space<vmem>>, vector<1x4xf32>
    %135 = vector.broadcast %134 : vector<1x4xf32> to vector<128x4xf32>
    %136 = arith.addf %133, %135 : vector<128x4xf32>
    %137 = arith.mulf %136, %122 : vector<128x4xf32>
    %138 = vector.shape_cast %137 : vector<128x4xf32> to vector<8x16x4xf32>
    %cst_91 = arith.constant dense<0.000000e+00> : vector<8x16xf32>
    %139 = vector.multi_reduction <add>, %138, %cst_91 [2] : vector<8x16x4xf32> to vector<8x16xf32>
    %c0_92 = arith.constant 0 : index
    %c0_93 = arith.constant 0 : index
    %c0_94 = arith.constant 0 : index
    %140 = vector.load %arg14[%c0_92, %c0_93, %c0_94] : memref<1x8x16xf32, #tpu.memory_space<vmem>>, vector<1x8x16xf32>
    %141 = vector.shape_cast %140 : vector<1x8x16xf32> to vector<8x16xf32>
    %142 = vector.shape_cast %139 : vector<8x16xf32> to vector<1x8x16xf32>
    tpu.vector_store %arg14[%c0_92, %c0_93, %c0_94], %142 {strides = array<i32>} : memref<1x8x16xf32, #tpu.memory_space<vmem>>, vector<1x8x16xf32>,
    return
  }
  func.func @transform_0(%arg0: i32, %arg1: i32) -> (i32, i32, i32, i32) {
    %c0_i32 = arith.constant 0 : i32
    %c0_i32_0 = arith.constant 0 : i32
    %c0_i32_1 = arith.constant 0 : i32
    %c0_i32_2 = arith.constant 0 : i32
    return %arg0, %c0_i32, %c0_i32_0, %c0_i32_1 : i32, i32, i32, i32
  }
  func.func @transform_1(%arg0: i32, %arg1: i32) -> (i32, i32, i32) {
    %c0_i32 = arith.constant 0 : i32
    %c0_i32_0 = arith.constant 0 : i32
    return %arg0, %arg1, %c0_i32 : i32, i32, i32
  }
  func.func @transform_2(%arg0: i32, %arg1: i32) -> (i32, i32, i32) {
    %c0_i32 = arith.constant 0 : i32
    %c0_i32_0 = arith.constant 0 : i32
    %c0_i32_1 = arith.constant 0 : i32
    %c0_i32_2 = arith.constant 0 : i32
    return %c0_i32, %c0_i32_0, %c0_i32_1 : i32, i32, i32
  }
  func.func @transform_3(%arg0: i32, %arg1: i32) -> (i32, i32) {
    %c0_i32 = arith.constant 0 : i32
    %c0_i32_0 = arith.constant 0 : i32
    %c0_i32_1 = arith.constant 0 : i32
    return %c0_i32, %c0_i32_0 : i32, i32
  }
  func.func @transform_4(%arg0: i32, %arg1: i32) -> (i32, i32) {
    %c0_i32 = arith.constant 0 : i32
    %c0_i32_0 = arith.constant 0 : i32
    %c0_i32_1 = arith.constant 0 : i32
    return %c0_i32, %c0_i32_0 : i32, i32
  }
  func.func @transform_5(%arg0: i32, %arg1: i32) -> (i32, i32) {
    %c0_i32 = arith.constant 0 : i32
    %c0_i32_0 = arith.constant 0 : i32
    %c0_i32_1 = arith.constant 0 : i32
    return %c0_i32, %c0_i32_0 : i32, i32
  }
  func.func @transform_6(%arg0: i32, %arg1: i32) -> (i32, i32) {
    %c0_i32 = arith.constant 0 : i32
    %c0_i32_0 = arith.constant 0 : i32
    %c0_i32_1 = arith.constant 0 : i32
    return %c0_i32, %c0_i32_0 : i32, i32
  }
  func.func @transform_7(%arg0: i32, %arg1: i32) -> (i32, i32, i32) {
    %c0_i32 = arith.constant 0 : i32
    %c0_i32_0 = arith.constant 0 : i32
    %c0_i32_1 = arith.constant 0 : i32
    %c0_i32_2 = arith.constant 0 : i32
    return %c0_i32, %c0_i32_0, %c0_i32_1 : i32, i32, i32
  }
  func.func @transform_8(%arg0: i32, %arg1: i32) -> (i32, i32) {
    %c0_i32 = arith.constant 0 : i32
    %c0_i32_0 = arith.constant 0 : i32
    %c0_i32_1 = arith.constant 0 : i32
    return %c0_i32, %c0_i32_0 : i32, i32
  }
  func.func @transform_9(%arg0: i32, %arg1: i32) -> (i32, i32) {
    %c0_i32 = arith.constant 0 : i32
    %c0_i32_0 = arith.constant 0 : i32
    %c0_i32_1 = arith.constant 0 : i32
    return %c0_i32, %c0_i32_0 : i32, i32
  }
  func.func @transform_10(%arg0: i32, %arg1: i32) -> (i32, i32) {
    %c0_i32 = arith.constant 0 : i32
    %c0_i32_0 = arith.constant 0 : i32
    %c0_i32_1 = arith.constant 0 : i32
    return %c0_i32, %c0_i32_0 : i32, i32
  }
  func.func @transform_11(%arg0: i32, %arg1: i32) -> (i32, i32) {
    %c0_i32 = arith.constant 0 : i32
    %c0_i32_0 = arith.constant 0 : i32
    %c0_i32_1 = arith.constant 0 : i32
    return %c0_i32, %c0_i32_0 : i32, i32
  }
  func.func @transform_12(%arg0: i32, %arg1: i32) -> (i32, i32, i32) {
    %c0_i32 = arith.constant 0 : i32
    %c0_i32_0 = arith.constant 0 : i32
    return %arg0, %arg1, %c0_i32 : i32, i32, i32
  }
}

</mosaic_0001>

<bundles_post_ra>
// kernel: tpu_custom_call.1
= control target key start
LH: loop header
LB: loop body
LE: loop exit
PB: predicated region body
PF: predicated region fallthrough
CT: control target
= control target key end

     0   :  { %17 = vsyncpa [#allocation3], 0  ;;  %s6666_s0 = inlined_call_operand.vmem [shape: bf16[2,18,18,4], index: 0, kind: input, shape index: {}]   ;;  %s6667_s1 = inlined_call_operand.vmem [shape: bf16[2,256,4], index: 1, kind: input, shape index: {}]   ;;  %s6668_s2 = inlined_call_operand.vmem [shape: bf16[9,4,4], index: 2, kind: input, shape index: {}]   ;;  %s6669_s3 = inlined_call_operand.vmem [shape: f32[1,4], index: 3, kind: input, shape index: {}]   ;;  %s6670_s4 = inlined_call_operand.vmem [shape: f32[1,4], index: 4, kind: input, shape index: {}]   ;;  %s6671_s5 = inlined_call_operand.vmem [shape: bf16[4,4], index: 5, kind: input, shape index: {}]   ;;  %s6672_s6 = inlined_call_operand.vmem [shape: f32[1,4], index: 6, kind: input, shape index: {}]   ;;  %s6673_s7 = inlined_call_operand.vmem [shape: bf16[9,4,32], index: 7, kind: input, shape index: {}]   ;;  %s6674_s8 = inlined_call_operand.vmem [shape: f32[1,32], index: 8, kind: input, shape index: {}]   ;;  %s6675_s9 = inlined_call_operand.vmem [shape: f32[1,32], index: 9, kind: input, shape index: {}]   ;;  %s6676_s10 = inlined_call_operand.vmem [shape: bf16[32,4], index: 10, kind: input, shape index: {}]   ;;  %s6677_s11 = inlined_call_operand.vmem [shape: f32[1,4], index: 11, kind: input, shape index: {}]   ;;  %s6678_s12 = inlined_call_operand.hbm [shape: f32[2,16,16], index: 12, kind: output, shape index: {}]  }
   0x1   :  { %19 = vsyncpa [#allocation3 + $0x1], 0  ;;  %s5415_s21 = smov 0   ;;  %s5417_s22 = smov 0  }
   0x2   :  { %s5419_s23 = smov 0   ;;  %s5421_s24 = smov 0  }
   0x3   :  { %s5423_s25 = smov 0   ;;  %s5425_s26 = smov 0  }
   0x4   :  { %s5427_s27 = smov 0   ;;  %s5429_s28 = smov 0  }
   0x5 LB: > { %6684 = sst [smem:[#allocation5_spill]] %s5327_s23  ;;  %s4005_s29 = sadd.s32 4294967295, %s5347_s28   ;;  %s5347_s28 = sphi %s5429_s28, %s25_s28   ;;  %s5343_s27 = sphi %s5427_s27, %s6701_s27   ;;  %s5339_s26 = sphi %s5425_s26, %s6700_s26   ;;  %s5335_s25 = sphi %s5423_s25, %s6699_s25   ;;  %s5331_s24 = sphi %s5421_s24, %s6698_s24   ;;  %s5327_s23 = sphi %s5419_s23, %s6697_s23   ;;  %s5323_s22 = sphi %s5417_s22, %s6703_s22   ;;  %s5319_s21 = sphi %s5415_s21, %s6702_s21  }
   0x6   : > { %6685 = sst [smem:[#allocation6_spill]] %s5339_s26  ;;  %s4006_s30 = sadd.s32 4294967294, %s5347_s28  }
   0x7   : > { %6686 = sst [smem:[#allocation7_spill]] %s5343_s27  ;;  %s34_s13 = sadd.s32 1, %s5339_s26 }
   0x8   : > { %p35_p0 = scmp.ge.s32.totalorder %s34_s13, 2  ;;  %s37_s14 = sadd.s32 1, %s5343_s27 }
   0x9   : > { %p320_p1 = scmp.ne.s32.totalorder %s5327_s23, %s5323_s22  ;;  %p321_p2 = scmp.eq.s32.totalorder %s4005_s29, 3 }
   0xa   : > { %s6705_s13 = smov (%p35_p0, %s34_s13), 0  ;;  %s6707_s14 = smov (!%p35_p0, %s37_s14), %s5343_s27 }
   0xb   : > { %6687 = sst [smem:[#allocation8_spill]] %s6705_s13  ;;  %s306_s15 = ssub.s32 %s5339_s26, %s6705_s13 }
   0xc   : > { %p5466_p3 = por %p321_p2, %p320_p1  ;;  %p39_p4 = scmp.ge.s32.totalorder %s6707_s14, 2 }
   0xd   : > { %p326_p5 = scmp.ne.s32.totalorder %s5323_s22, %s5319_s21  ;;  %p327_p6 = scmp.eq.s32.totalorder %s4006_s30, 3 }
   0xe   : > { %p4009_p7 = scmp.ge.s32.totalorder %s5347_s28, 1  ;;  %s6709_s14 = smov (%p39_p4, %s6707_s14), 0 }
   0xf   : > { %6689 = sst [smem:[#allocation9_spill]] %s6709_s14  ;;  %p5475_p8 = por %p327_p6, %p326_p5 }
  0x10   : > { %p396_p9 = scmp.lt.s32.totalorder %s5347_s28, 5  ;;  %s305_s18 = ssub.s32 %s5343_s27, %s6709_s14 }
  0x11   : > { %s310_s19 = sadd.s32 1, %s5327_s23  ;;  %s307_s20 = sor.u32 %s306_s15, %s305_s18 }
  0x12   : > { %p397_p10 = pnand %p4009_p7, %p396_p9  ;;  %p308_p11 = scmp.eq.s32.totalorder %s307_s20, 0 }
  0x13   : > { %v4018_v0 = vld [vmem:[%s6668_s2 + $0x2] sm:$0x3] (!%p397_p10)  ;;  %vm745_vm0 = vcmask (!%p397_p10), 1041408   ;;  %p447_p12 = scmp.lt.s32.totalorder (!%p397_p10), %s5335_s25, 1  ;;  %v497_v2 = vld [vmem:[%s6668_s2] sm:$0x3] (!%p397_p10) }
  0x14   : > { %s5484_s29 = scalar_select %p308_p11, %s5327_s23, %s310_s19  }
  0x15   : > { %400 = sbr.rel (%p397_p10) target bundleno = 1256 (0x4e8), region = 68  ;;  %5086 = vmatprep.subr.msk.bf16.mxu0 (!%p397_p10), %vm745_vm0, %v4018_v0  ;;  %v747_v1 = vsel (!%p397_p10), %vm745_vm0, %v4018_v0, 0  ;;  %v4035_v3 = vld [vmem:[%s6673_s7 + $0x2] sm:$0x3] (!%p397_p10)  ;;  %v498_v5 = vld [vmem:[%s6673_s7] sm:$0x3] (!%p397_p10) }
  0x16   : > { %6691 = sst [smem:[#allocation10_spill]] %s5484_s29  ;;  %4469 = vmatpush3.bf16.msra.mxu0 (!%p397_p10), %v747_v1  ;;  %s4247_s19 = smul.u32 (!%p397_p10), 96, %s5331_s24  ;;  %5087 = vmatprep.subr.msk.bf16.mxu1 (!%p397_p10), %vm745_vm0, %v4035_v3  ;;  %v849_v4 = vsel (!%p397_p10), %vm745_vm0, %v4035_v3, 0  ;;  %vm499_vm1 = vsmask.f32 (!%p397_p10), 3328  ;;  %vm720_vm3 = vcmask (!%p397_p10), 31744  }
  0x17   : > { %5088 = vmatprep.subr.msk.bf16.mxu0 (!%p397_p10), %vm745_vm0, %v497_v2  ;;  %4487 = vmatpush3.bf16.msra.mxu1 (!%p397_p10), %v849_v4  ;;  %vm500_vm2 = vsmask.f32 (!%p397_p10), 7440  ;;  %v1013_v34 = vsel (!%p397_p10), %vm745_vm0, %v497_v2, 0  ;;  %v1113_v39 = vsel (!%p397_p10), %vm745_vm0, %v498_v5, 0  ;;  %vm1220_vm5 = vcmask (!%p397_p10), 1042432   ;;  %s4012_s26 = sshll.u32 (!%p397_p10), %s5331_s24, 4 }
  0x18   : > { %5089 = vmatprep.subr.msk.bf16.mxu1 (!%p397_p10), %vm745_vm0, %v498_v5  ;;  %vm5548_vm4 = vmor (!%p397_p10), %vm499_vm1, %vm500_vm2  ;;  %vm1221_vm6 = vcmask (!%p397_p10), 1046532   ;;  %vm3602_vm8 = vcmask (!%p397_p10), 261120   ;;  %p455_p13 = scmp.lt.s32.totalorder (!%p397_p10), %s4012_s26, 31  ;;  %vm3815_vm9 = vcmask (!%p397_p10), 130112   ;;  %vm3880_vm10 = vcmask (!%p397_p10), 1041409  }
  0x19   : > { %vm5730_vm7 = vmor (!%p397_p10), %vm1220_vm5, %vm1221_vm6  ;;  %vm3882_vm11 = vcmask (!%p397_p10), 1042434   ;;  %vm3884_vm12 = vcmask (!%p397_p10), 1043459   ;;  %vm3886_vm13 = vcmask (!%p397_p10), 1044484   ;;  %vm3888_vm14 = vcmask (!%p397_p10), 1045509  }
  0x1a   : > { %vm3890_vm15 = vcmask (!%p397_p10), 1046534   ;;  %vm3895_vm1 = vcmask (!%p397_p10), 130048  }
  0x1c   : > { %s5493_s30 = scalar_select %p447_p12, %s5335_s25, 1 }
  0x1d   : > { %s6711_s26 = smov (!%p455_p13, %s4012_s26), 31 }
  0x1e   : > { %s5105_s20 = smul.u32 216, %s5493_s30  ;;  %s4013_s13 = sshll.u32 %s5493_s30, 5 }
  0x20   : > { %s451_s29 = scalar_lea.vmem %s6666_s0, %s5105_s20  ;;  %s458_s20 = sadd.s32 %s4013_s13, %s6711_s26 }
  0x21   : > { %s5513_s23 = scalar_lea.vmem %s451_s29, %s4247_s19  ;;  %s4014_s15 = sshll.u32 %s458_s20, 2 }
  0x22   : > { %v5516_v6 = vld [vmem:[%s5513_s23] sm:$0xf]  ;;  %v5519_v7 = vld [vmem:[%s5513_s23 + $0x4] sm:$0xf]  ;;  %v5522_v8 = vld [vmem:[%s5513_s23 + $0x8] sm:$0x1]  ;;  %s6316_s14 = scalar_lea.vmem %s6667_s1, %s4014_s15 }
  0x23   : > { %v503_v9 = vshrl.u32 %v5516_v6, 16  ;;  %v506_v10 = vshll.u32 %v5516_v6, 16  ;;  %v512_v11 = vshll.u32 %v5519_v7, 16  ;;  %v516_v12 = vshrl.u32 %v5519_v7, 16  ;;  %v5529_v13 = vld [vmem:[%s5513_s23 + $0xc] sm:$0xf] }
  0x24   : > { %v522_v14 = vshll.u32 %v5522_v8, 16  ;;  %v5533_v15 = vld [vmem:[%s5513_s23 + $0x10] sm:$0xf]  ;;  %v5536_v16 = vld [vmem:[%s5513_s23 + $0x14] sm:$0x1]  ;;  %v527_v22 = vshrl.u32 %v5529_v13, 16 }
  0x25   : > { %v505_v17 = vrot.slane %v503_v9, 4  ;;  %v508_v18 = vrot.slane %v506_v10, 5  ;;  %v514_v19 = vrot.slane %v512_v11, 5  ;;  %v518_v20 = vrot.slane %v516_v12, 4  ;;  %v5544_v29 = vld [vmem:[%s5513_s23 + $0x18] sm:$0xf] }
  0x26   : > { %v524_v21 = vrot.slane %v522_v14, 5  ;;  %v530_v23 = vshll.u32 %v5529_v13, 16  ;;  %v536_v24 = vshll.u32 %v5533_v15, 16  ;;  %v540_v27 = vshrl.u32 %v5533_v15, 16  ;;  %v5554_v35 = vld [vmem:[%s5513_s23 + $0x1c] sm:$0xf] }
  0x27   : > { %v509_v25 = vor.u32 %v508_v18, %v505_v17  ;;  %v519_v26 = vor.u32 %v518_v20, %v514_v19  ;;  %v546_v28 = vshll.u32 %v5536_v16, 16  ;;  %v529_v31 = vrot.slane %v527_v22, 4  ;;  %v5558_v42 = vld [vmem:[%s5513_s23 + $0x20] sm:$0x1]  ;;  %v5568_v49 = vld [vmem:[%s5513_s23 + $0x24] sm:$0xf] }
  0x28   : > { %v532_v32 = vrot.slane %v530_v23, 5  ;;  %v538_v33 = vrot.slane %v536_v24, 5  ;;  %v542_v38 = vrot.slane %v540_v27, 4  ;;  %v551_v43 = vshrl.u32 %v5544_v29, 16  ;;  %v5571_v54 = vld [vmem:[%s5513_s23 + $0x28] sm:$0xf] }
  0x29   : > { %v510_v36 = vrot.slane %v509_v25, 4  ;;  %v520_v37 = vrot.slane %v519_v26, 4  ;;  %v548_v41 = vrot.slane %v546_v28, 5  ;;  %v554_v44 = vshll.u32 %v5544_v29, 16  ;;  %v5579_v61 = vld [vmem:[%s5513_s23 + $0x2c] sm:$0x1] }
  0x2a   : > { %v533_v40 = vor.u32 %v532_v32, %v529_v31  ;;  %v543_v47 = vor.u32 %v542_v38, %v538_v33  ;;  %v560_v48 = vshll.u32 %v5554_v35, 16  ;;  %v553_v52 = vrot.slane %v551_v43, 4  ;;  %v5588_v4 = vld [vmem:[%s5513_s23 + $0x30] sm:$0xf]  ;;  %v5593_v12 = vld [vmem:[%s5513_s23 + $0x34] sm:$0xf] }
  0x2b   : > { %v515_v45 = vsel %vm5548_vm4, %v510_v36, %v514_v19  ;;  %v525_v46 = vsel %vm5548_vm4, %v520_v37, %v524_v21  ;;  %v556_v53 = vrot.slane %v554_v44, 5  ;;  %v564_v57 = vshrl.u32 %v5554_v35, 16  ;;  %v5600_v20 = vld [vmem:[%s6668_s2 + $0x4] sm:$0x3]  ;;  %v5607_v23 = vld [vmem:[%s5513_s23 + $0x38] sm:$0x1] }
  0x2c   : > { %v4019_v50 = vcombine.low %v515_v45, %v525_v46  ;;  %v534_v51 = vrot.slane %v533_v40, 4  ;;  %v544_v55 = vrot.slane %v543_v47, 4  ;;  %v562_v56 = vrot.slane %v560_v48, 5  ;;  %v5617_v32 = vld [vmem:[%s6673_s7 + $0x4] sm:$0x3]  ;;  %s444_s26 = sand.u32 1, %s5323_s22  }
  0x2d   : > { %v570_v58 = vshll.u32 %v5558_v42, 16  ;;  %v557_v60 = vor.u32 %v556_v53, %v553_v52  ;;  %v575_v62 = vshrl.u32 %v5568_v49, 16  ;;  %v578_v63 = vshll.u32 %v5568_v49, 16  ;;  %v5621_v40 = vld [vmem:[%s5513_s23 + $0x3c] sm:$0xf]  ;;  %s6598_s13 = sshll.u32 %s444_s26, 3 }
  0x2e   : > { %4470 = vmatprep.mubr.msk.bf16.mxu0 %vm720_vm3, %v4019_v50  ;;  %v539_v59 = vsel %vm5548_vm4, %v534_v51, %v538_v33  ;;  %4488 = vmatprep.mubr.msk.bf16.mxu1 %vm720_vm3, %v4019_v50  ;;  %v549_v0 = vsel %vm5548_vm4, %v544_v55, %v548_v41  ;;  %v566_v1 = vrot.slane %v564_v57, 4  ;;  %v584_v3 = vshll.u32 %v5571_v54, 16  ;;  %v5631_v44 = vld [vmem:[%s5513_s23 + $0x40] sm:$0xf]  ;;  %v5638_v50 = vld [vmem:[%s5513_s23 + $0x44] sm:$0x1] }
  0x2f   : > { %v572_v2 = vrot.slane %v570_v58, 5  ;;  %v5590_v5 = vcombine.low %v539_v59, %v549_v0  ;;  %v558_v9 = vrot.slane %v557_v60, 4  ;;  %v577_v10 = vrot.slane %v575_v62, 4  ;;  %v5647_v60 = vld [vmem:[%s5513_s23 + $0x48] sm:$0xf]  ;;  %s4243_s20 = sshll.u32 %s5335_s25, 1 }
  0x30   : > { %v580_v11 = vrot.slane %v578_v63, 5  ;;  %v567_v14 = vor.u32 %v566_v1, %v562_v56  ;;  %v586_v17 = vrot.slane %v584_v3, 5  ;;  %v588_v18 = vshrl.u32 %v5571_v54, 16  ;;  %s3909_s15 = sadd.s32 %s5331_s24, %s4243_s20  ;;  %s446_s18 = scalar_lea.vmem [#allocation2], %s6598_s13 }
  0x31   : > { %v594_v19 = vshll.u32 %v5579_v61, 16  ;;  %4471 = vmatmul.mubr.msk.bf16.vlgmr.msra.gmra.mrb[0].mxu0 %vm720_vm3, %v5590_v5  ;;  %v563_v21 = vsel %vm5548_vm4, %v558_v9, %v562_v56  ;;  %v599_v24 = vshrl.u32 %v5588_v4, 16  ;;  %v602_v25 = vshll.u32 %v5588_v4, 16  ;;  %4489 = vmatmul.mubr.msk.bf16.vlgmr.msra.gmra.mrb[0].mxu1 %vm720_vm3, %v5590_v5  ;;  %s4244_s25 = sshll.u32 %s3909_s15, 7  ;;  %s3913_s27 = sshll.u32 %s446_s18, 4  ;;  %s6613_s27 = int_to_ptr.vmem [resolvable:$true] %s3913_s27 }
  0x32   : > { %v581_v22 = vor.u32 %v580_v11, %v577_v10  ;;  %4505 = vmatpush3.bf16.msra.mxu0 %v1013_v34  ;;  %v568_v26 = vrot.slane %v567_v14, 4  ;;  %v590_v27 = vrot.slane %v588_v18, 4  ;;  %v608_v31 = vshll.u32 %v5593_v12, 16  ;;  %4523 = vmatpush3.bf16.msra.mxu1 %v1113_v39  ;;  %s6611_s29 = scalar_lea.hbm %s6678_s12, %s4244_s25  ;;  %s5253_s30 = scalar_lea.vmem %s6613_s27, 128 }
  0x33   : > { %v596_v28 = vrot.slane %v594_v19, 5  ;;  %v601_v36 = vrot.slane %v599_v24, 4  ;;  %v604_v37 = vrot.slane %v602_v25, 5  ;;  %v612_v38 = vshrl.u32 %v5593_v12, 16  ;;  %5090 = vmatprep.subr.msk.bf16.mxu0 %vm745_vm0, %v5600_v20  ;;  %5091 = vmatprep.subr.msk.bf16.mxu1 %vm745_vm0, %v5617_v32  ;;  %v5662_v19 = vld [vmem:[%s5513_s23 + $0x50] sm:$0x1]  ;;  %p5254_p0 = scmp.ne.s32.totalorder %s6613_s27, %s5253_s30 }
  0x34   : > { %v582_v33 = vrot.slane %v581_v22, 4  ;;  %v573_v34 = vsel %vm5548_vm4, %v568_v26, %v572_v2  ;;  %v591_v39 = vor.u32 %v590_v27, %v586_v17  ;;  %v610_v41 = vrot.slane %v608_v31, 5  ;;  %v5655_v2 = vld [vmem:[%s5513_s23 + $0x4c] sm:$0xf]  ;;  %v5673_v27 = vld [vmem:[%s5513_s23 + $0x54] sm:$0xf] }
  0x35   : > { %v618_v43 = vshll.u32 %v5607_v23, 16  ;;  %v5633_v45 = vcombine.low %v563_v21, %v573_v34  ;;  %v605_v47 = vor.u32 %v604_v37, %v601_v36  ;;  %v614_v48 = vrot.slane %v612_v38, 4  ;;  %v5680_v37 = vld [vmem:[%s5513_s23 + $0x58] sm:$0xf]  ;;  %p5255_p1 = pnand %p5254_p0, %p5466_p3  ;;  %s5349_s19 = smov [#allocation2]  }
  0x36   : > { %v587_v46 = vsel %vm5548_vm4, %v582_v33, %v586_v17  ;;  %v592_v51 = vrot.slane %v591_v39, 4  ;;  %v623_v53 = vshrl.u32 %v5621_v40, 16  ;;  %v626_v55 = vshll.u32 %v5621_v40, 16  ;;  %s5257_s13 = sshll.u32 %s5349_s19, 4  ;;  %s5258_s13 = int_to_ptr.vmem [resolvable:$false] %s5257_s13 }
  0x37   : > { %v620_v52 = vrot.slane %v618_v43, 5  ;;  %4474 = vmatprep.mubr.msk.bf16.mxu0 %vm720_vm3, %v5633_v45  ;;  %v606_v56 = vrot.slane %v605_v47, 4  ;;  %v615_v57 = vor.u32 %v614_v48, %v610_v41  ;;  %v632_v58 = vshll.u32 %v5631_v44, 16  ;;  %4492 = vmatprep.mubr.msk.bf16.mxu1 %vm720_vm3, %v5633_v45  ;;  %p5256_p2 = pneg %p5255_p1  ;;  %s5259_s20 = scalar_lea.vmem %s5258_s13, 256 }
  0x38   : > { %v636_v59 = vshrl.u32 %v5631_v44, 16  ;;  %v597_v62 = vsel %vm5548_vm4, %v592_v51, %v596_v28  ;;  %v625_v63 = vrot.slane %v623_v53, 4  ;;  %v628_v0 = vrot.slane %v626_v55, 5  ;;  %v5692_v55 = vld [vmem:[%s5513_s23 + $0x5c] sm:$0x1]  ;;  %p5260_p4 = scmp.lt.s32.totalorder %s6613_s27, %s5258_s13  ;;  %p5261_p5 = scmp.lt.s32.totalorder %s5259_s20, %s5253_s30 }
  0x39   : > { %v642_v1 = vshll.u32 %v5638_v50, 16  ;;  %v5657_v3 = vcombine.low %v587_v46, %v597_v62  ;;  %v611_v9 = vsel %vm5548_vm4, %v606_v56, %v610_v41  ;;  %v616_v10 = vrot.slane %v615_v57, 4 }
  0x3a   : > { %v634_v11 = vrot.slane %v632_v58, 5  ;;  %v629_v14 = vor.u32 %v628_v0, %v625_v63  ;;  %v638_v17 = vrot.slane %v636_v59, 4  ;;  %v647_v21 = vshrl.u32 %v5647_v60, 16  ;;  %p5262_p6 = por %p5261_p5, %p5260_p4 }
  0x3b   : > { %v644_v18 = vrot.slane %v642_v1, 5  ;;  %4475 = vmatmul.mubr.msk.bf16.gmra.mrb[4].mxu0 %vm720_vm3, %v5657_v3  ;;  %v621_v22 = vsel %vm5548_vm4, %v616_v10, %v620_v52  ;;  %v650_v24 = vshll.u32 %v5647_v60, 16  ;;  %v656_v25 = vshll.u32 %v5655_v2, 16  ;;  %4493 = vmatmul.mubr.msk.bf16.gmra.mrb[4].mxu1 %vm720_vm3, %v5657_v3 }
  0x3c   : > { %v660_v26 = vshrl.u32 %v5655_v2, 16  ;;  %v5677_v28 = vcombine.low %v611_v9, %v621_v22  ;;  %v630_v31 = vrot.slane %v629_v14, 4  ;;  %v639_v33 = vor.u32 %v638_v17, %v634_v11  ;;  %p5263_p7 = pnand %p5262_p6, %p5256_p2 }
  0x3d   : > { %v649_v36 = vrot.slane %v647_v21, 4  ;;  %v652_v38 = vrot.slane %v650_v24, 5  ;;  %v658_v34 = vrot.slane %v656_v25, 5  ;;  %v666_v41 = vshll.u32 %v5662_v19, 16 }
  0x3e   : > { %v662_v39 = vrot.slane %v660_v26, 4  ;;  %4478 = vmatprep.mubr.msk.bf16.mxu0 %vm720_vm3, %v5677_v28  ;;  %v635_v43 = vsel %vm5548_vm4, %v630_v31, %v634_v11  ;;  %v640_v46 = vrot.slane %v639_v33, 4  ;;  %v671_v47 = vshrl.u32 %v5673_v27, 16  ;;  %4496 = vmatprep.mubr.msk.bf16.mxu1 %vm720_vm3, %v5677_v28 }
  0x3f   : > { %v674_v48 = vshll.u32 %v5673_v27, 16  ;;  %v653_v51 = vor.u32 %v652_v38, %v649_v36  ;;  %v668_v53 = vrot.slane %v666_v41, 5  ;;  %v680_v56 = vshll.u32 %v5680_v37, 16 }
  0x40   : > { %v663_v52 = vor.u32 %v662_v39, %v658_v34  ;;  %v645_v57 = vsel %vm5548_vm4, %v640_v46, %v644_v18  ;;  %v673_v58 = vrot.slane %v671_v47, 4  ;;  %v684_v62 = vshrl.u32 %v5680_v37, 16 }
  0x41   : > { %v676_v59 = vrot.slane %v674_v48, 5  ;;  %v5698_v63 = vcombine.low %v635_v43, %v645_v57  ;;  %v654_v0 = vrot.slane %v653_v51, 4  ;;  %v682_v9 = vrot.slane %v680_v56, 5 }
  0x42   : > { %v664_v1 = vrot.slane %v663_v52, 4  ;;  %v686_v11 = vrot.slane %v684_v62, 4  ;;  %v690_v14 = vshll.u32 %v5692_v55, 16  ;;  %v5703_v17 = vsel %vm745_vm0, %v5600_v20, 0 }
  0x43   : > { %v677_v10 = vor.u32 %v676_v59, %v673_v58  ;;  %v1228_v21 = vrot.slane %v5522_v8, 5  ;;  %v1232_v18 = vrot.slane %v5533_v15, 5  ;;  %4479 = vmatmul.mubr.msk.bf16.gmra.mrb[8].mxu0 %vm720_vm3, %v5698_v63  ;;  %v659_v22 = vsel %vm5548_vm4, %v654_v0, %v658_v34  ;;  %4497 = vmatmul.mubr.msk.bf16.gmra.mrb[8].mxu1 %vm720_vm3, %v5698_v63  ;;  %v5188_v34 = vld [vmem:[%s6676_s10 + $0x8] sm:$0xff]  }
  0x44   : > { %v669_v24 = vsel %vm5548_vm4, %v664_v1, %v668_v53  ;;  %v687_v31 = vor.u32 %v686_v11, %v682_v9  ;;  %v692_v33 = vrot.slane %v690_v14, 5  ;;  %v1235_v8 = vrot.slane %v5536_v16, 5 }
  0x45   : > { %v5713_v25 = vcombine.low %v659_v22, %v669_v24  ;;  %v678_v26 = vrot.slane %v677_v10, 4  ;;  %v4044_v20 = vcombine.low %v5516_v6, %v5519_v7  ;;  %v5722_v36 = vcombine.low %v5529_v13, %v5533_v15 }
  0x46   : > { %v5726_v38 = vcombine.low %v5544_v29, %v5554_v35  ;;  %v688_v39 = vrot.slane %v687_v31, 4  ;;  %v4068_v15 = vrot.slane %v5516_v6, 9  ;;  %v1225_v41 = vrot.slane %v5519_v7, 5 }
  0x47   : > { %4482 = vmatprep.mubr.msk.bf16.mxu0 %vm720_vm3, %v5713_v25  ;;  %v683_v16 = vsel %vm5548_vm4, %v678_v26, %v682_v9  ;;  %4500 = vmatprep.mubr.msk.bf16.mxu1 %vm720_vm3, %v5713_v25  ;;  %v4069_v43 = vrot.slane %v5529_v13, 9  ;;  %v1234_v46 = vrot.slane %v1232_v18, 4  ;;  %v4070_v47 = vrot.slane %v5544_v29, 9 }
  0x48   : > { %v1239_v48 = vrot.slane %v5554_v35, 5  ;;  %v693_v51 = vsel %vm5548_vm4, %v688_v39, %v692_v33  ;;  %v1226_v52 = vsel %vm5730_vm7, %v4068_v15, %v1225_v41  ;;  %v1227_v53 = vrot.slane %v1225_v41, 4 }
  0x49   : > { %v1242_v6 = vrot.slane %v5558_v42, 5  ;;  %v5750_v7 = vcombine.low %v683_v16, %v693_v51  ;;  %v1233_v56 = vsel %vm5730_vm7, %v4069_v43, %v1232_v18  ;;  %v1236_v13 = vsel %vm5730_vm7, %v1234_v46, %v1235_v8  ;;  %v4102_v51 = vld [vmem:[%s6668_s2 + $0x6] sm:$0x3] }
  0x4a   : > { %v1240_v29 = vsel %vm5730_vm7, %v4070_v47, %v1239_v48  ;;  %v1229_v35 = vsel %vm5730_vm7, %v1227_v53, %v1228_v21  ;;  %v5760_v57 = vcombine.low %v1233_v56, %v1236_v13  ;;  %v1241_v58 = vrot.slane %v1239_v48, 4 }
  0x4b   : > { %v4071_v59 = vrot.slane %v5568_v49, 9  ;;  %4483 = vmatmul.mubr.msk.bf16.gmra.mrb[12].mxu0 %vm720_vm3, %v5750_v7  ;;  %v5765_v42 = vcombine.low %v1226_v52, %v1229_v35  ;;  %v1246_v62 = vrot.slane %v5571_v54, 5  ;;  %v1249_v0 = vrot.slane %v5579_v61, 5  ;;  %4501 = vmatmul.mubr.msk.bf16.gmra.mrb[12].mxu1 %vm720_vm3, %v5750_v7  ;;  %v4112_v35 = vld [vmem:[%s6673_s7 + $0x6] sm:$0x3] }
  0x4c   : > { %v4072_v1 = vrot.slane %v5588_v4, 9  ;;  %4506 = vmatprep.mubr.msk.bf16.mxu0 %vm720_vm3, %v4044_v20  ;;  %v1243_v9 = vsel %vm5730_vm7, %v1241_v58, %v1242_v6  ;;  %v1253_v10 = vrot.slane %v5593_v12, 5  ;;  %v1256_v11 = vrot.slane %v5607_v23, 5  ;;  %4524 = vmatprep.mubr.msk.bf16.mxu1 %vm720_vm3, %v4044_v20 }
  0x4d   : > { %v4073_v14 = vrot.slane %v5621_v40, 9  ;;  %v5778_v21 = vcombine.low %v1240_v29, %v1243_v9  ;;  %v1247_v61 = vsel %vm5730_vm7, %v4071_v59, %v1246_v62  ;;  %v1248_v18 = vrot.slane %v1246_v62, 4  ;;  %v5958_v62 = vld [vmem:[%s5513_s23 + $0x64] sm:$0xf]  ;;  %v4160_v9 = vld [vmem:[%s6668_s2 + $0xc] sm:$0x3] }
  0x4e   : > { %v1260_v22 = vrot.slane %v5631_v44, 5  ;;  %v1254_v24 = vsel %vm5730_vm7, %v4072_v1, %v1253_v10  ;;  %v1255_v26 = vrot.slane %v1253_v10, 4  ;;  %v1263_v31 = vrot.slane %v5638_v50, 5 }
  0x4f   : > { %v4074_v23 = vrot.slane %v5647_v60, 9  ;;  %v1250_v33 = vsel %vm5730_vm7, %v1248_v18, %v1249_v0  ;;  %v1267_v39 = vrot.slane %v5655_v2, 5  ;;  %v1270_v41 = vrot.slane %v5662_v19, 5  ;;  %v4170_v18 = vld [vmem:[%s6673_s7 + $0xc] sm:$0x3] }
  0x50   : > { %v1261_v8 = vsel %vm5730_vm7, %v4073_v14, %v1260_v22  ;;  %v1262_v16 = vrot.slane %v1260_v22, 4  ;;  %v5793_v15 = vcombine.low %v1247_v61, %v1250_v33  ;;  %v1257_v20 = vsel %vm5730_vm7, %v1255_v26, %v1256_v11 }
  0x51   : > { %v4075_v50 = vrot.slane %v5673_v27, 9  ;;  %v5799_v43 = vcombine.low %v1254_v24, %v1257_v20  ;;  %v1268_v47 = vsel %vm5730_vm7, %v4074_v23, %v1267_v39  ;;  %v1269_v48 = vrot.slane %v1267_v39, 4  ;;  %v493_v23 = vld [vmem:[%s5513_s23 + $0x68] sm:$0x1] }
  0x52   : > { %v1264_v46 = vsel %vm5730_vm7, %v1262_v16, %v1263_v31  ;;  %v1274_v53 = vrot.slane %v5680_v37, 5  ;;  %v1277_v19 = vrot.slane %v5692_v55, 5  ;;  %v1432_v56 = vsel %vm745_vm0, %v5617_v32, 0 }
  0x53   : > { %v5808_v52 = vcombine.low %v1261_v8, %v1264_v46  ;;  %4507 = vmatmul.mubr.msk.bf16.vlgmr.msra.gmra.mrb[0].mxu0 %vm720_vm3, %v5722_v36  ;;  %v1271_v6 = vsel %vm5730_vm7, %v1269_v48, %v1270_v41  ;;  %4525 = vmatmul.mubr.msk.bf16.vlgmr.msra.gmra.mrb[0].mxu1 %vm720_vm3, %v5722_v36  ;;  %v5844_v59 = vcombine.low %v5588_v4, %v5593_v12  ;;  %v1574_v12 = vsel %vm745_vm0, %v4102_v51, 0 }
  0x54   : > { %4541 = vmatpush3.bf16.msra.mxu0 %v5703_v17  ;;  %4510 = vmatprep.mubr.msk.bf16.mxu0 %vm720_vm3, %v5726_v38  ;;  %v5821_v13 = vcombine.low %v1268_v47, %v1271_v6  ;;  %v1275_v29 = vsel %vm5730_vm7, %v4075_v50, %v1274_v53  ;;  %v1276_v55 = vrot.slane %v1274_v53, 4  ;;  %v5837_v17 = vcombine.low %v5568_v49, %v5571_v54 }
  0x55   : > { %5092 = vmatprep.subr.msk.bf16.mxu0 %vm745_vm0, %v4102_v51  ;;  %4528 = vmatprep.mubr.msk.bf16.mxu1 %vm720_vm3, %v5726_v38  ;;  %v5856_v49 = vcombine.low %v5621_v40, %v5631_v44  ;;  %v5860_v54 = vcombine.low %v5647_v60, %v5655_v2  ;;  %v5872_v4 = vcombine.low %v5673_v27, %v5680_v37  ;;  %v4121_v40 = vld [vmem:[%s6668_s2 + $0x8] sm:$0x3]  ;;  %v1676_v44 = vsel %vm745_vm0, %v4112_v35, 0  ;;  %v4141_v27 = vld [vmem:[%s6668_s2 + $0xa] sm:$0x3] }
  0x56   : > { %v1278_v32 = vsel %vm5730_vm7, %v1276_v55, %v1277_v19  ;;  %4559 = vmatpush3.bf16.msra.mxu1 %v1432_v56  ;;  %v4131_v60 = vld [vmem:[%s6673_s7 + $0x8] sm:$0x3]  ;;  %v1840_v2 = vsel %vm745_vm0, %v4121_v40, 0  ;;  %v2090_v1 = vsel %vm745_vm0, %v4141_v27, 0  ;;  %v1821_v61 = vshrl.u32 %v5958_v62, 16 }
  0x57   : > { %v5839_v58 = vcombine.low %v1275_v29, %v1278_v32  ;;  %5093 = vmatprep.subr.msk.bf16.mxu1 %vm745_vm0, %v4112_v35  ;;  %v1942_v37 = vsel %vm745_vm0, %v4131_v60, 0  ;;  %v1827_v16 = vshll.u32 %v493_v23, 16  ;;  %v2334_v48 = vsel %vm745_vm0, %v4160_v9, 0  ;;  %v4179_v51 = vld [vmem:[%s6668_s2 + $0xe] sm:$0x3] }
  0x58   : > { %v1823_v31 = vrot.slane %v1821_v61, 4  ;;  %v2436_v53 = vsel %vm745_vm0, %v4170_v18, 0  ;;  %v4189_v19 = vld [vmem:[%s6673_s7 + $0xe] sm:$0x3]  ;;  %v2079_v29 = vrot.slane %v493_v23, 5 }
  0x59   : > { %v1829_v41 = vrot.slane %v1827_v16, 5 }
  0x5b   : > { %4511 = vmatmul.mubr.msk.bf16.gmra.mrb[4].mxu0 %vm720_vm3, %v5837_v17  ;;  %4529 = vmatmul.mubr.msk.bf16.gmra.mrb[4].mxu1 %vm720_vm3, %v5837_v17 }
  0x5c   : > { %4514 = vmatprep.mubr.msk.bf16.mxu0 %vm720_vm3, %v5844_v59  ;;  %4532 = vmatprep.mubr.msk.bf16.mxu1 %vm720_vm3, %v5844_v59 }
  0x63   : > { %4515 = vmatmul.mubr.msk.bf16.gmra.mrb[8].mxu0 %vm720_vm3, %v5856_v49  ;;  %4533 = vmatmul.mubr.msk.bf16.gmra.mrb[8].mxu1 %vm720_vm3, %v5856_v49 }
  0x64   : > { %4518 = vmatprep.mubr.msk.bf16.mxu0 %vm720_vm3, %v5860_v54  ;;  %4536 = vmatprep.mubr.msk.bf16.mxu1 %vm720_vm3, %v5860_v54 }
  0x6b   : > { %4519 = vmatmul.mubr.msk.bf16.gmra.mrb[12].mxu0 %vm720_vm3, %v5872_v4  ;;  %4537 = vmatmul.mubr.msk.bf16.gmra.mrb[12].mxu1 %vm720_vm3, %v5872_v4 }
  0x6c   : > { %4542 = vmatprep.mubr.msk.bf16.mxu0 %vm720_vm3, %v5765_v42  ;;  %4560 = vmatprep.mubr.msk.bf16.mxu1 %vm720_vm3, %v5765_v42  ;;  %v5955_v42 = vld [vmem:[%s5513_s23 + $0x60] sm:$0xf] }
  0x6d   : > { %v5966_v0 = vcombine.low %v5955_v42, %v5958_v62  ;;  %v1808_v11 = vshrl.u32 %v5955_v42, 16  ;;  %v1811_v14 = vshll.u32 %v5955_v42, 16  ;;  %v4140_v6 = vrot.slane %v5955_v42, 9 }
  0x6f   : > { %v1810_v22 = vrot.slane %v1808_v11, 4  ;;  %v1813_v24 = vrot.slane %v1811_v14, 5 }
  0x71   : > { %v1814_v33 = vor.u32 %v1813_v24, %v1810_v22  ;;  %v6219_v24 = vld [vmem:[%s6670_s4] ss:$0 sm:$0xff] }
  0x73   : > { %4543 = vmatmul.mubr.msk.bf16.vlgmr.msra.gmra.mrb[0].mxu0 %vm720_vm3, %v5760_v57  ;;  %4561 = vmatmul.mubr.msk.bf16.vlgmr.msra.gmra.mrb[0].mxu1 %vm720_vm3, %v5760_v57  ;;  %v1815_v39 = vrot.slane %v1814_v33, 4 }
  0x74   : > { %4577 = vmatpush3.bf16.msra.mxu0 %v1574_v12  ;;  %4546 = vmatprep.mubr.msk.bf16.mxu0 %vm720_vm3, %v5778_v21  ;;  %v2600_v12 = vsel %vm745_vm0, %v4179_v51, 0 }
  0x75   : > { %5094 = vmatprep.subr.msk.bf16.mxu0 %vm745_vm0, %v4121_v40  ;;  %4564 = vmatprep.mubr.msk.bf16.mxu1 %vm720_vm3, %v5778_v21  ;;  %v4199_v40 = vld [vmem:[%s6668_s2 + $0x10] sm:$0x3] }
  0x76   : > { %4595 = vmatpush3.bf16.msra.mxu1 %v1676_v44  ;;  %v2702_v44 = vsel %vm745_vm0, %v4189_v19, 0 }
  0x77   : > { %5095 = vmatprep.subr.msk.bf16.mxu1 %vm745_vm0, %v4131_v60 }
  0x7b   : > { %4547 = vmatmul.mubr.msk.bf16.gmra.mrb[4].mxu0 %vm720_vm3, %v5793_v15  ;;  %4565 = vmatmul.mubr.msk.bf16.gmra.mrb[4].mxu1 %vm720_vm3, %v5793_v15 }
  0x7c   : > { %4550 = vmatprep.mubr.msk.bf16.mxu0 %vm720_vm3, %v5799_v43  ;;  %4568 = vmatprep.mubr.msk.bf16.mxu1 %vm720_vm3, %v5799_v43 }
  0x83   : > { %4551 = vmatmul.mubr.msk.bf16.gmra.mrb[8].mxu0 %vm720_vm3, %v5808_v52  ;;  %4569 = vmatmul.mubr.msk.bf16.gmra.mrb[8].mxu1 %vm720_vm3, %v5808_v52 }
  0x84   : > { %4554 = vmatprep.mubr.msk.bf16.mxu0 %vm720_vm3, %v5821_v13  ;;  %4572 = vmatprep.mubr.msk.bf16.mxu1 %vm720_vm3, %v5821_v13 }
  0x8b   : > { %4555 = vmatmul.mubr.msk.bf16.gmra.mrb[12].mxu0 %vm720_vm3, %v5839_v58  ;;  %4573 = vmatmul.mubr.msk.bf16.gmra.mrb[12].mxu1 %vm720_vm3, %v5839_v58 }
  0x8c   : > { %4578 = vmatprep.mubr.msk.bf16.mxu0 %vm720_vm3, %v5722_v36  ;;  %4596 = vmatprep.mubr.msk.bf16.mxu1 %vm720_vm3, %v5722_v36  ;;  %v4151_v36 = vld [vmem:[%s6673_s7 + $0xa] sm:$0x3] }
  0x8d   : > { %v2192_v10 = vsel %vm745_vm0, %v4151_v36, 0 }
  0x93   : > { %4579 = vmatmul.mubr.msk.bf16.vlgmr.msra.gmra.mrb[0].mxu0 %vm720_vm3, %v5726_v38  ;;  %4597 = vmatmul.mubr.msk.bf16.vlgmr.msra.gmra.mrb[0].mxu1 %vm720_vm3, %v5726_v38 }
  0x94   : > { %4613 = vmatpush3.bf16.msra.mxu0 %v1840_v2  ;;  %4582 = vmatprep.mubr.msk.bf16.mxu0 %vm720_vm3, %v5837_v17 }
  0x95   : > { %5096 = vmatprep.subr.msk.bf16.mxu0 %vm745_vm0, %v4141_v27  ;;  %4600 = vmatprep.mubr.msk.bf16.mxu1 %vm720_vm3, %v5837_v17 }
  0x96   : > { %4631 = vmatpush3.bf16.msra.mxu1 %v1942_v37 }
  0x97   : > { %5097 = vmatprep.subr.msk.bf16.mxu1 %vm745_vm0, %v4151_v36 }
  0x9b   : > { %4583 = vmatmul.mubr.msk.bf16.gmra.mrb[4].mxu0 %vm720_vm3, %v5844_v59  ;;  %4601 = vmatmul.mubr.msk.bf16.gmra.mrb[4].mxu1 %vm720_vm3, %v5844_v59 }
  0x9c   : > { %4586 = vmatprep.mubr.msk.bf16.mxu0 %vm720_vm3, %v5856_v49  ;;  %4604 = vmatprep.mubr.msk.bf16.mxu1 %vm720_vm3, %v5856_v49 }
  0xa3   : > { %4587 = vmatmul.mubr.msk.bf16.gmra.mrb[8].mxu0 %vm720_vm3, %v5860_v54  ;;  %4605 = vmatmul.mubr.msk.bf16.gmra.mrb[8].mxu1 %vm720_vm3, %v5860_v54 }
  0xa4   : > { %4590 = vmatprep.mubr.msk.bf16.mxu0 %vm720_vm3, %v5872_v4  ;;  %4608 = vmatprep.mubr.msk.bf16.mxu1 %vm720_vm3, %v5872_v4 }
  0xab   : > { %4591 = vmatmul.mubr.msk.bf16.gmra.mrb[12].mxu0 %vm720_vm3, %v5966_v0  ;;  %4609 = vmatmul.mubr.msk.bf16.gmra.mrb[12].mxu1 %vm720_vm3, %v5966_v0 }
  0xac   : > { %4614 = vmatprep.mubr.msk.bf16.mxu0 %vm720_vm3, %v5590_v5  ;;  %4632 = vmatprep.mubr.msk.bf16.mxu1 %vm720_vm3, %v5590_v5  ;;  %v1817_v5 = vshll.u32 %v5958_v62, 16 }
  0xae   : > { %v1819_v26 = vrot.slane %v1817_v5, 5 }
  0xb0   : > { %v1824_v8 = vor.u32 %v1823_v31, %v1819_v26  ;;  %v1820_v50 = vsel %vm5548_vm4, %v1815_v39, %v1819_v26  ;;  %v6224_v26 = vld [vmem:[%s6674_s8] ss:$0 sm:$0xff] }
  0xb1   : > { %v6231_v39 = vld [vmem:[%s6675_s9] ss:$0 sm:$0xff] }
  0xb2   : > { %v1825_v20 = vrot.slane %v1824_v8, 4 }
  0xb3   : > { %4615 = vmatmul.mubr.msk.bf16.vlgmr.msra.gmra.mrb[0].mxu0 %vm720_vm3, %v5633_v45  ;;  %4633 = vmatmul.mubr.msk.bf16.vlgmr.msra.gmra.mrb[0].mxu1 %vm720_vm3, %v5633_v45 }
  0xb4   : > { %4649 = vmatpush3.bf16.msra.mxu0 %v2090_v1  ;;  %4618 = vmatprep.mubr.msk.bf16.mxu0 %vm720_vm3, %v5657_v3  ;;  %v1830_v46 = vsel %vm5548_vm4, %v1825_v20, %v1829_v41  ;;  %v496_v1 = vld [vmem:[%s5513_s23 + $0x74] sm:$0x1] }
  0xb5   : > { %5098 = vmatprep.subr.msk.bf16.mxu0 %vm745_vm0, %v4160_v9  ;;  %4636 = vmatprep.mubr.msk.bf16.mxu1 %vm720_vm3, %v5657_v3  ;;  %v6019_v47 = vcombine.low %v1820_v50, %v1830_v46 }
  0xb6   : > { %4667 = vmatpush3.bf16.msra.mxu1 %v2192_v10 }
  0xb7   : > { %5099 = vmatprep.subr.msk.bf16.mxu1 %vm745_vm0, %v4170_v18 }
  0xbb   : > { %4619 = vmatmul.mubr.msk.bf16.gmra.mrb[4].mxu0 %vm720_vm3, %v5677_v28  ;;  %4637 = vmatmul.mubr.msk.bf16.gmra.mrb[4].mxu1 %vm720_vm3, %v5677_v28 }
  0xbc   : > { %4622 = vmatprep.mubr.msk.bf16.mxu0 %vm720_vm3, %v5698_v63  ;;  %4640 = vmatprep.mubr.msk.bf16.mxu1 %vm720_vm3, %v5698_v63 }
  0xc3   : > { %4623 = vmatmul.mubr.msk.bf16.gmra.mrb[8].mxu0 %vm720_vm3, %v5713_v25  ;;  %4641 = vmatmul.mubr.msk.bf16.gmra.mrb[8].mxu1 %vm720_vm3, %v5713_v25 }
  0xc4   : > { %4626 = vmatprep.mubr.msk.bf16.mxu0 %vm720_vm3, %v5750_v7  ;;  %4644 = vmatprep.mubr.msk.bf16.mxu1 %vm720_vm3, %v5750_v7 }
  0xcb   : > { %4627 = vmatmul.mubr.msk.bf16.gmra.mrb[12].mxu0 %vm720_vm3, %v6019_v47  ;;  %4645 = vmatmul.mubr.msk.bf16.gmra.mrb[12].mxu1 %vm720_vm3, %v6019_v47 }
  0xcc   : > { %4650 = vmatprep.mubr.msk.bf16.mxu0 %vm720_vm3, %v5760_v57  ;;  %4668 = vmatprep.mubr.msk.bf16.mxu1 %vm720_vm3, %v5760_v57  ;;  %v2076_v57 = vrot.slane %v5958_v62, 5 }
  0xce   : > { %v2078_v56 = vrot.slane %v2076_v57, 4  ;;  %v2077_v55 = vsel %vm5730_vm7, %v4140_v6, %v2076_v57 }
  0xd0   : > { %v2080_v35 = vsel %vm5730_vm7, %v2078_v56, %v2079_v29 }
  0xd1   : > { %v6069_v32 = vcombine.low %v2077_v55, %v2080_v35 }
  0xd3   : > { %4651 = vmatmul.mubr.msk.bf16.vlgmr.msra.gmra.mrb[0].mxu0 %vm720_vm3, %v5778_v21  ;;  %4669 = vmatmul.mubr.msk.bf16.vlgmr.msra.gmra.mrb[0].mxu1 %vm720_vm3, %v5778_v21 }
  0xd4   : > { %4685 = vmatpush3.bf16.msra.mxu0 %v2334_v48  ;;  %4654 = vmatprep.mubr.msk.bf16.mxu0 %vm720_vm3, %v5793_v15 }
  0xd5   : > { %5100 = vmatprep.subr.msk.bf16.mxu0 %vm745_vm0, %v4179_v51  ;;  %4672 = vmatprep.mubr.msk.bf16.mxu1 %vm720_vm3, %v5793_v15 }
  0xd6   : > { %4703 = vmatpush3.bf16.msra.mxu1 %v2436_v53 }
  0xd7   : > { %5101 = vmatprep.subr.msk.bf16.mxu1 %vm745_vm0, %v4189_v19 }
  0xdb   : > { %4655 = vmatmul.mubr.msk.bf16.gmra.mrb[4].mxu0 %vm720_vm3, %v5799_v43  ;;  %4673 = vmatmul.mubr.msk.bf16.gmra.mrb[4].mxu1 %vm720_vm3, %v5799_v43 }
  0xdc   : > { %4658 = vmatprep.mubr.msk.bf16.mxu0 %vm720_vm3, %v5808_v52  ;;  %4676 = vmatprep.mubr.msk.bf16.mxu1 %vm720_vm3, %v5808_v52 }
  0xe3   : > { %4659 = vmatmul.mubr.msk.bf16.gmra.mrb[8].mxu0 %vm720_vm3, %v5821_v13  ;;  %4677 = vmatmul.mubr.msk.bf16.gmra.mrb[8].mxu1 %vm720_vm3, %v5821_v13 }
  0xe4   : > { %4662 = vmatprep.mubr.msk.bf16.mxu0 %vm720_vm3, %v5839_v58  ;;  %4680 = vmatprep.mubr.msk.bf16.mxu1 %vm720_vm3, %v5839_v58 }
  0xeb   : > { %4663 = vmatmul.mubr.msk.bf16.gmra.mrb[12].mxu0 %vm720_vm3, %v6069_v32  ;;  %4681 = vmatmul.mubr.msk.bf16.gmra.mrb[12].mxu1 %vm720_vm3, %v6069_v32 }
  0xec   : > { %4686 = vmatprep.mubr.msk.bf16.mxu0 %vm720_vm3, %v5726_v38  ;;  %4704 = vmatprep.mubr.msk.bf16.mxu1 %vm720_vm3, %v5726_v38  ;;  %v4209_v38 = vld [vmem:[%s6673_s7 + $0x10] sm:$0x3] }
  0xed   : > { %v2952_v60 = vsel %vm745_vm0, %v4209_v38, 0 }
  0xf3   : > { %4687 = vmatmul.mubr.msk.bf16.vlgmr.msra.gmra.mrb[0].mxu0 %vm720_vm3, %v5837_v17  ;;  %4705 = vmatmul.mubr.msk.bf16.vlgmr.msra.gmra.mrb[0].mxu1 %vm720_vm3, %v5837_v17  ;;  %v6110_v17 = vld [vmem:[%s5513_s23 + $0x6c] sm:$0xf] }
  0xf4   : > { %4721 = vmatpush3.bf16.msra.mxu0 %v2600_v12  ;;  %4690 = vmatprep.mubr.msk.bf16.mxu0 %vm720_vm3, %v5844_v59  ;;  %v2568_v2 = vshrl.u32 %v6110_v17, 16  ;;  %v2571_v27 = vshll.u32 %v6110_v17, 16 }
  0xf5   : > { %5102 = vmatprep.subr.msk.bf16.mxu0 %vm745_vm0, %v4199_v40  ;;  %4708 = vmatprep.mubr.msk.bf16.mxu1 %vm720_vm3, %v5844_v59  ;;  %v6113_v59 = vld [vmem:[%s5513_s23 + $0x70] sm:$0xf]  ;;  %s3898_s23 = scalar_lea.sflag [#allocation3], %s444_s26 }
  0xf6   : > { %4739 = vmatpush3.bf16.msra.mxu1 %v2702_v44  ;;  %v2581_v37 = vshrl.u32 %v6113_v59, 16  ;;  %v2570_v36 = vrot.slane %v2568_v2, 4  ;;  %v2573_v42 = vrot.slane %v2571_v27, 5 }
  0xf7   : > { %5103 = vmatprep.subr.msk.bf16.mxu1 %vm745_vm0, %v4209_v38 }
  0xf8   : > { %v2574_v9 = vor.u32 %v2573_v42, %v2570_v36 }
  0xfb   : > { %4691 = vmatmul.mubr.msk.bf16.gmra.mrb[4].mxu0 %vm720_vm3, %v5856_v49  ;;  %4709 = vmatmul.mubr.msk.bf16.gmra.mrb[4].mxu1 %vm720_vm3, %v5856_v49  ;;  %v4161_v49 = vcombine.low %v6110_v17, %v6113_v59 }
  0xfc   : > { %4694 = vmatprep.mubr.msk.bf16.mxu0 %vm720_vm3, %v5860_v54  ;;  %4712 = vmatprep.mubr.msk.bf16.mxu1 %vm720_vm3, %v5860_v54  ;;  %v2850_v54 = vsel %vm745_vm0, %v4199_v40, 0 }
 0x103   : > { %4695 = vmatmul.mubr.msk.bf16.gmra.mrb[8].mxu0 %vm720_vm3, %v5872_v4  ;;  %4713 = vmatmul.mubr.msk.bf16.gmra.mrb[8].mxu1 %vm720_vm3, %v5872_v4  ;;  %v3153_v4 = vld [vmem:[%s6671_s5] sm:$0x3] }
 0x104   : > { %4698 = vmatprep.mubr.msk.bf16.mxu0 %vm720_vm3, %v5966_v0  ;;  %4716 = vmatprep.mubr.msk.bf16.mxu1 %vm720_vm3, %v5966_v0  ;;  %v2583_v0 = vrot.slane %v2581_v37, 4  ;;  %v3186_v30 = vsel %vm745_vm0, %v3153_v4, 0 }
 0x10b   : > { %4699 = vmatmul.mubr.msk.bf16.gmra.mrb[12].mxu0 %vm720_vm3, %v4161_v49  ;;  %4717 = vmatmul.mubr.msk.bf16.gmra.mrb[12].mxu1 %vm720_vm3, %v4161_v49 }
 0x10c   : > { %4722 = vmatprep.mubr.msk.bf16.mxu0 %vm720_vm3, %v5633_v45  ;;  %4740 = vmatprep.mubr.msk.bf16.mxu1 %vm720_vm3, %v5633_v45  ;;  %v2577_v45 = vshll.u32 %v6113_v59, 16 }
 0x10e   : > { %v2579_v62 = vrot.slane %v2577_v45, 5 }
 0x110   : > { %v2584_v10 = vor.u32 %v2583_v0, %v2579_v62 }
 0x112   : > { %v2585_v11 = vrot.slane %v2584_v10, 4 }
 0x113   : > { %4723 = vmatmul.mubr.msk.bf16.vlgmr.msra.gmra.mrb[0].mxu0 %vm720_vm3, %v5657_v3  ;;  %4741 = vmatmul.mubr.msk.bf16.vlgmr.msra.gmra.mrb[0].mxu1 %vm720_vm3, %v5657_v3  ;;  %v2587_v3 = vshll.u32 %v496_v1, 16 }
 0x114   : > { %4757 = vmatpush3.bf16.msra.mxu0 %v2850_v54  ;;  %4726 = vmatprep.mubr.msk.bf16.mxu0 %vm720_vm3, %v5677_v28 }
 0x115   : > { %5104 = vmatprep.subr.msk.bf16.mxu0 %vm745_vm0, %v3153_v4  ;;  %4744 = vmatprep.mubr.msk.bf16.mxu1 %vm720_vm3, %v5677_v28  ;;  %v2575_v28 = vrot.slane %v2574_v9, 4  ;;  %v2589_v14 = vrot.slane %v2587_v3, 5  ;;  %vm3892_vm0 = vcmask 1047559  }
 0x116   : > { %4775 = vmatpush3.bf16.msra.mxu1 %v2952_v60 }
 0x117   : > { %v2580_v61 = vsel %vm5548_vm4, %v2575_v28, %v2579_v62  ;;  %v2590_v5 = vsel %vm5548_vm4, %v2585_v11, %v2589_v14 }
 0x11b   : > { %4727 = vmatmul.mubr.msk.bf16.gmra.mrb[4].mxu0 %vm720_vm3, %v5698_v63  ;;  %4745 = vmatmul.mubr.msk.bf16.gmra.mrb[4].mxu1 %vm720_vm3, %v5698_v63  ;;  %v4180_v63 = vcombine.low %v2580_v61, %v2590_v5 }
 0x11c   : > { %4730 = vmatprep.mubr.msk.bf16.mxu0 %vm720_vm3, %v5713_v25  ;;  %4748 = vmatprep.mubr.msk.bf16.mxu1 %vm720_vm3, %v5713_v25  ;;  %v2836_v25 = vrot.slane %v6113_v59, 5 }
 0x123   : > { %4731 = vmatmul.mubr.msk.bf16.gmra.mrb[8].mxu0 %vm720_vm3, %v5750_v7  ;;  %4749 = vmatmul.mubr.msk.bf16.gmra.mrb[8].mxu1 %vm720_vm3, %v5750_v7  ;;  %v4198_v7 = vrot.slane %v6110_v17, 9 }
 0x124   : > { %4734 = vmatprep.mubr.msk.bf16.mxu0 %vm720_vm3, %v6019_v47  ;;  %4752 = vmatprep.mubr.msk.bf16.mxu1 %vm720_vm3, %v6019_v47 }
 0x12b   : > { %4735 = vmatmul.mubr.msk.bf16.gmra.mrb[12].mxu0 %vm720_vm3, %v4180_v63  ;;  %4753 = vmatmul.mubr.msk.bf16.gmra.mrb[12].mxu1 %vm720_vm3, %v4180_v63 }
 0x12c   : > { %4758 = vmatprep.mubr.msk.bf16.mxu0 %vm720_vm3, %v5778_v21  ;;  %4776 = vmatprep.mubr.msk.bf16.mxu1 %vm720_vm3, %v5778_v21  ;;  %v2838_v21 = vrot.slane %v2836_v25, 4 }
 0x133   : > { %4759 = vmatmul.mubr.msk.bf16.vlgmr.msra.gmra.mrb[0].mxu0 %vm720_vm3, %v5793_v15  ;;  %4777 = vmatmul.mubr.msk.bf16.vlgmr.msra.gmra.mrb[0].mxu1 %vm720_vm3, %v5793_v15  ;;  %v2839_v15 = vrot.slane %v496_v1, 5 }
 0x134   : > { %4762 = vmatprep.mubr.msk.bf16.mxu0 %vm720_vm3, %v5799_v43  ;;  %4793 = vmatpush3.bf16.msra.mxu0 %v3186_v30 }
 0x135   : > { %4780 = vmatprep.mubr.msk.bf16.mxu1 %vm720_vm3, %v5799_v43  ;;  %v2837_v43 = vsel %vm5730_vm7, %v4198_v7, %v2836_v25  ;;  %v2840_v18 = vsel %vm5730_vm7, %v2838_v21, %v2839_v15 }
 0x13b   : > { %4763 = vmatmul.mubr.msk.bf16.gmra.mrb[4].mxu0 %vm720_vm3, %v5808_v52  ;;  %4781 = vmatmul.mubr.msk.bf16.gmra.mrb[4].mxu1 %vm720_vm3, %v5808_v52  ;;  %v4200_v52 = vcombine.low %v2837_v43, %v2840_v18 }
 0x13c   : > { %4766 = vmatprep.mubr.msk.bf16.mxu0 %vm720_vm3, %v5821_v13  ;;  %4784 = vmatprep.mubr.msk.bf16.mxu1 %vm720_vm3, %v5821_v13  ;;  %v5187_v13 = vld [vmem:[%s6676_s10] sm:$0xff]  }
 0x13d   : > { %4810 = vmatprep.subr.bf16.mxu1 %v5187_v13 }
 0x13e   : > { %4811 = vmatpush3.bf16.msra.mxu1 %v5187_v13 }
 0x13f   : > { %4812 = vmatprep.subr.bf16.mxu1 %v5188_v34 }
 0x142   : > { %4813 = vmatpush3.bf16.msra.mxu1 %v5188_v34 }
 0x143   : > { %4767 = vmatmul.mubr.msk.bf16.gmra.mrb[8].mxu0 %vm720_vm3, %v5839_v58  ;;  %4785 = vmatmul.mubr.msk.bf16.gmra.mrb[8].mxu1 %vm720_vm3, %v5839_v58  ;;  %v6214_v58 = vld [vmem:[%s6669_s3] ss:$0 sm:$0xff] }
 0x144   : > { %4770 = vmatprep.mubr.msk.bf16.mxu0 %vm720_vm3, %v6069_v32  ;;  %4788 = vmatprep.mubr.msk.bf16.mxu1 %vm720_vm3, %v6069_v32 }
 0x14b   : > { %4771 = vmatmul.mubr.msk.bf16.gmra.mrb[12].mxu0 %vm720_vm3, %v4200_v52  ;;  %4789 = vmatmul.mubr.msk.bf16.gmra.mrb[12].mxu1 %vm720_vm3, %v4200_v52 }
 0x206   : > { %v4760_v22 = vpop.f32.mrb[0].mxu0  ;;  %v4778_v16 = vpop.f32.mrb[0].mxu1 }
 0x207   : > { %v3092_v31 = vmul.f32 %v4760_v22, %v6214_v58  ;;  %v2886_v23 = vpop.f32.mrb[1].mxu0  ;;  %v3518_v46 = vmul.f32 %v4778_v16, %v6224_v26  ;;  %v2988_v47 = vpop.f32.mrb[1].mxu1 }
 0x208   : > { %v3090_v33 = vmul.f32 %v6214_v58, %v2886_v23  ;;  %v4761_v8 = vpop.f32.mrb[2].mxu0  ;;  %v3516_v53 = vmul.f32 %v6224_v26, %v2988_v47  ;;  %v4779_v19 = vpop.f32.mrb[2].mxu1 }
 0x209   : > { %v3115_v20 = vadd.f32 %v6219_v24, %v3092_v31  ;;  %v3093_v41 = vmul.f32 %v4761_v8, %v6214_v58  ;;  %v2889_v50 = vpop.f32.mrb[3].mxu0  ;;  %v3541_v6 = vadd.f32 %v6231_v39, %v3518_v46  ;;  %v3519_v56 = vmul.f32 %v4779_v19, %v6224_v26  ;;  %v2991_v29 = vpop.f32.mrb[3].mxu1 }
 0x20a   : > { %v3113_v48 = vadd.f32 %v6219_v24, %v3090_v33  ;;  %v3091_v51 = vmul.f32 %v6214_v58, %v2889_v50  ;;  %v3539_v35 = vadd.f32 %v6231_v39, %v3516_v53  ;;  %v3517_v32 = vmul.f32 %v6224_v26, %v2991_v29 }
 0x20b   : > { %v3116_v57 = vadd.f32 %v6219_v24, %v3093_v41  ;;  %v3131_v12 = vmax.f32 %v3115_v20, 0.0  ;;  %v3557_v44 = vmax.f32 %v3541_v6, 0.0  ;;  %v3542_v38 = vadd.f32 %v6231_v39, %v3519_v56 }
 0x20c   : > { %v3114_v55 = vadd.f32 %v6219_v24, %v3091_v51  ;;  %v3129_v17 = vmax.f32 %v3113_v48, 0.0  ;;  %v3555_v54 = vmax.f32 %v3539_v35, 0.0  ;;  %v3540_v4 = vadd.f32 %v6231_v39, %v3517_v32 }
 0x20d   : > { %v3132_v40 = vmax.f32 %v3116_v57, 0.0  ;;  %v3558_v37 = vmax.f32 %v3542_v38, 0.0 }
 0x20e   : > { %v3130_v59 = vmax.f32 %v3114_v55, 0.0  ;;  %v4764_v49 = vpop.f32.mrb[4].mxu0  ;;  %v3556_v62 = vmax.f32 %v3540_v4, 0.0  ;;  %v4782_v0 = vpop.f32.mrb[4].mxu1 }
 0x20f   : > { %v3146_v60 = vpack.c.bf16 %v3132_v40, %v3131_v12  ;;  %v3096_v2 = vmul.f32 %v4764_v49, %v6214_v58  ;;  %v2902_v27 = vpop.f32.mrb[5].mxu0  ;;  %v3572_v3 = vpack.c.bf16 %v3558_v37, %v3557_v44  ;;  %v3522_v28 = vmul.f32 %v4782_v0, %v6224_v26  ;;  %v3004_v11 = vpop.f32.mrb[5].mxu1 }
 0x210   : > { %v3145_v45 = vpack.c.bf16 %v3130_v59, %v3129_v17  ;;  %v3094_v36 = vmul.f32 %v6214_v58, %v2902_v27  ;;  %v4765_v42 = vpop.f32.mrb[6].mxu0  ;;  %v3571_v5 = vpack.c.bf16 %v3556_v62, %v3555_v54  ;;  %v3520_v63 = vmul.f32 %v6224_v26, %v3004_v11  ;;  %v4783_v30 = vpop.f32.mrb[6].mxu1 }
 0x211   : > { %v3119_v1 = vadd.f32 %v6219_v24, %v3096_v2  ;;  %v3097_v9 = vmul.f32 %v4765_v42, %v6214_v58  ;;  %v2905_v10 = vpop.f32.mrb[7].mxu0  ;;  %v3545_v7 = vadd.f32 %v6231_v39, %v3522_v28  ;;  %v3523_v21 = vmul.f32 %v4783_v30, %v6224_v26  ;;  %v3007_v15 = vpop.f32.mrb[7].mxu1 }
 0x212   : > { %v3117_v14 = vadd.f32 %v6219_v24, %v3094_v36  ;;  %v3095_v61 = vmul.f32 %v6214_v58, %v2905_v10  ;;  %4794 = vmatprep.mubr.msk.bf16.mxu0 %vm720_vm3, %v3145_v45  ;;  %v3543_v18 = vadd.f32 %v6231_v39, %v3520_v63  ;;  %v3521_v52 = vmul.f32 %v6224_v26, %v3007_v15 }
 0x213   : > { %v3120_v25 = vadd.f32 %v6219_v24, %v3097_v9  ;;  %4795 = vmatmul.mubr.msk.bf16.vlgmr.msra.gmra.mrb[16].mxu0 %vm720_vm3, %v3146_v60  ;;  %4814 = vmatprep.mubr.msk.bf16.mxu1 %vm3602_vm8, %v3571_v5  ;;  %v3135_v13 = vmax.f32 %v3119_v1, 0.0  ;;  %v3561_v22 = vmax.f32 %v3545_v7, 0.0  ;;  %v3546_v31 = vadd.f32 %v6231_v39, %v3523_v21 }
 0x214   : > { %v3118_v43 = vadd.f32 %v6219_v24, %v3095_v61  ;;  %4815 = vmatmul.mubr.msk.bf16.vlgmr.msra.gmra.mrb[16].mxu1 %vm3602_vm8, %v3572_v3  ;;  %v3133_v23 = vmax.f32 %v3117_v14, 0.0  ;;  %v3559_v16 = vmax.f32 %v3543_v18, 0.0  ;;  %v3544_v20 = vadd.f32 %v6231_v39, %v3521_v52 }
 0x215   : > { %v3136_v34 = vmax.f32 %v3120_v25, 0.0  ;;  %v3562_v47 = vmax.f32 %v3546_v31, 0.0 }
 0x216   : > { %v3134_v33 = vmax.f32 %v3118_v43, 0.0  ;;  %v4768_v8 = vpop.f32.mrb[8].mxu0  ;;  %v3560_v19 = vmax.f32 %v3544_v20, 0.0  ;;  %v4786_v57 = vpop.f32.mrb[8].mxu1 }
 0x217   : > { %v3148_v41 = vpack.c.bf16 %v3136_v34, %v3135_v13  ;;  %v3100_v50 = vmul.f32 %v4768_v8, %v6214_v58  ;;  %v2918_v46 = vpop.f32.mrb[9].mxu0  ;;  %v3574_v55 = vpack.c.bf16 %v3562_v47, %v3561_v22  ;;  %v3526_v35 = vmul.f32 %v4786_v57, %v6224_v26  ;;  %v3020_v32 = vpop.f32.mrb[9].mxu1 }
 0x218   : > { %v3147_v48 = vpack.c.bf16 %v3134_v33, %v3133_v23  ;;  %v3098_v51 = vmul.f32 %v6214_v58, %v2918_v46  ;;  %v4769_v53 = vpop.f32.mrb[10].mxu0  ;;  %v3573_v44 = vpack.c.bf16 %v3560_v19, %v3559_v16  ;;  %v3524_v38 = vmul.f32 %v6224_v26, %v3020_v32  ;;  %v4787_v17 = vpop.f32.mrb[10].mxu1  ;;  %v4249_v32 = vld [vmem:[%s6316_s14] sm:$0xff]  }
 0x219   : > { %v3123_v6 = vadd.f32 %v6219_v24, %v3100_v50  ;;  %v3101_v56 = vmul.f32 %v4769_v53, %v6214_v58  ;;  %v2921_v29 = vpop.f32.mrb[11].mxu0  ;;  %v3549_v49 = vadd.f32 %v6231_v39, %v3526_v35  ;;  %v3527_v54 = vmul.f32 %v4787_v17, %v6224_v26  ;;  %v3023_v4 = vpop.f32.mrb[11].mxu1 }
 0x21a   : > { %v3121_v12 = vadd.f32 %v6219_v24, %v3098_v51  ;;  %v3099_v40 = vmul.f32 %v6214_v58, %v2921_v29  ;;  %4798 = vmatprep.mubr.msk.bf16.mxu0 %vm720_vm3, %v3147_v48  ;;  %v3547_v2 = vadd.f32 %v6231_v39, %v3524_v38  ;;  %v3525_v27 = vmul.f32 %v6224_v26, %v3023_v4 }
 0x21b   : > { %v3124_v59 = vadd.f32 %v6219_v24, %v3101_v56  ;;  %4799 = vmatmul.mubr.msk.bf16.gmra.mrb[20].mxu0 %vm720_vm3, %v3148_v41  ;;  %4818 = vmatprep.mubr.msk.bf16.mxu1 %vm3602_vm8, %v3573_v44  ;;  %v3139_v37 = vmax.f32 %v3123_v6, 0.0  ;;  %v3565_v36 = vmax.f32 %v3549_v49, 0.0  ;;  %v3550_v42 = vadd.f32 %v6231_v39, %v3527_v54 }
 0x21c   : > { %v3122_v60 = vadd.f32 %v6219_v24, %v3099_v40  ;;  %4819 = vmatmul.mubr.msk.bf16.gmra.mrb[20].mxu1 %vm3602_vm8, %v3574_v55  ;;  %v3137_v62 = vmax.f32 %v3121_v12, 0.0  ;;  %v3563_v9 = vmax.f32 %v3547_v2, 0.0  ;;  %v3548_v10 = vadd.f32 %v6231_v39, %v3525_v27  ;;  %v6323_v12 = vld [vmem:[%s6672_s6] ss:$0 sm:$0xff] }
 0x21d   : > { %v3140_v45 = vmax.f32 %v3124_v59, 0.0  ;;  %v3566_v14 = vmax.f32 %v3550_v42, 0.0  ;;  %v4250_v38 = vunpack.c.l.bf16 %v4249_v32 }
 0x21e   : > { %v3138_v0 = vmax.f32 %v3122_v60, 0.0  ;;  %v4772_v1 = vpop.f32.mrb[12].mxu0  ;;  %v3564_v30 = vmax.f32 %v3548_v10, 0.0  ;;  %v4790_v25 = vpop.f32.mrb[12].mxu1  ;;  %v4251_v60 = vunpack.c.h.bf16 %v4249_v32 }
 0x21f   : > { %v3150_v3 = vpack.c.bf16 %v3140_v45, %v3139_v37  ;;  %v3104_v28 = vmul.f32 %v4772_v1, %v6214_v58  ;;  %v2934_v11 = vpop.f32.mrb[13].mxu0  ;;  %v3576_v43 = vpack.c.bf16 %v3566_v14, %v3565_v36  ;;  %v3530_v18 = vmul.f32 %v4790_v25, %v6224_v26  ;;  %v3036_v52 = vpop.f32.mrb[13].mxu1 }
 0x220   : > { %v3149_v61 = vpack.c.bf16 %v3138_v0, %v3137_v62  ;;  %v3102_v5 = vmul.f32 %v6214_v58, %v2934_v11  ;;  %v4773_v63 = vpop.f32.mrb[14].mxu0  ;;  %v3575_v22 = vpack.c.bf16 %v3564_v30, %v3563_v9  ;;  %v3528_v31 = vmul.f32 %v6224_v26, %v3036_v52  ;;  %v4791_v23 = vpop.f32.mrb[14].mxu1  ;;  %v4282_v0 = vld [vmem:[%s6316_s14 + $0x18] sm:$0xff]  }
 0x221   : > { %v3127_v7 = vadd.f32 %v6219_v24, %v3104_v28  ;;  %v3105_v21 = vmul.f32 %v4773_v63, %v6214_v58  ;;  %v2937_v15 = vpop.f32.mrb[15].mxu0  ;;  %v3553_v8 = vadd.f32 %v6231_v39, %v3530_v18  ;;  %v3531_v16 = vmul.f32 %v4791_v23, %v6224_v26  ;;  %v3039_v20 = vpop.f32.mrb[15].mxu1 }
 0x222   : > { %v3125_v13 = vadd.f32 %v6219_v24, %v3102_v5  ;;  %v3103_v34 = vmul.f32 %v6214_v58, %v2937_v15  ;;  %4802 = vmatprep.mubr.msk.bf16.mxu0 %vm720_vm3, %v3149_v61  ;;  %v3551_v50 = vadd.f32 %v6231_v39, %v3528_v31  ;;  %v3529_v58 = vmul.f32 %v6224_v26, %v3039_v20  ;;  %v4281_v61 = vld [vmem:[%s6316_s14 + $0x10] sm:$0xff]  }
 0x223   : > { %v3128_v33 = vadd.f32 %v6219_v24, %v3105_v21  ;;  %4803 = vmatmul.mubr.msk.bf16.gmra.mrb[24].mxu0 %vm720_vm3, %v3150_v3  ;;  %4822 = vmatprep.mubr.msk.bf16.mxu1 %vm3602_vm8, %v3575_v22  ;;  %v3143_v46 = vmax.f32 %v3127_v7, 0.0  ;;  %v3569_v48 = vmax.f32 %v3553_v8, 0.0  ;;  %v3554_v51 = vadd.f32 %v6231_v39, %v3531_v16  ;;  %v4284_v8 = vld [vmem:[%s6316_s14 + $0x28] sm:$0xff]  }
 0x224   : > { %v3126_v41 = vadd.f32 %v6219_v24, %v3103_v34  ;;  %4823 = vmatmul.mubr.msk.bf16.gmra.mrb[24].mxu1 %vm3602_vm8, %v3576_v43  ;;  %v3141_v53 = vmax.f32 %v3125_v13, 0.0  ;;  %v3567_v57 = vmax.f32 %v3551_v50, 0.0  ;;  %v3552_v24 = vadd.f32 %v6231_v39, %v3529_v58  ;;  %v4280_v39 = vld [vmem:[%s6316_s14 + $0x8] sm:$0xff]  }
 0x225   : > { %v3144_v47 = vmax.f32 %v3128_v33, 0.0  ;;  %v3570_v56 = vmax.f32 %v3554_v51, 0.0  ;;  %v4254_v40 = vunpack.c.l.bf16 %v4280_v39  ;;  %v4255_v49 = vunpack.c.h.bf16 %v4280_v39  ;;  %v4283_v51 = vld [vmem:[%s6316_s14 + $0x20] sm:$0xff]  }
 0x226   : > { %v3142_v19 = vmax.f32 %v3126_v41, 0.0  ;;  %v3568_v26 = vmax.f32 %v3552_v24, 0.0  ;;  %v4262_v14 = vunpack.c.l.bf16 %v4282_v0  ;;  %v4263_v7 = vunpack.c.h.bf16 %v4282_v0 }
 0x227   : > { %v3152_v6 = vpack.c.bf16 %v3144_v47, %v3143_v46  ;;  %v3578_v55 = vpack.c.bf16 %v3570_v56, %v3569_v48  ;;  %v4258_v18 = vunpack.c.l.bf16 %v4281_v61  ;;  %v4259_v31 = vunpack.c.h.bf16 %v4281_v61 }
 0x228   : > { %v3151_v29 = vpack.c.bf16 %v3142_v19, %v3141_v53  ;;  %v3577_v35 = vpack.c.bf16 %v3568_v26, %v3567_v57  ;;  %v4270_v48 = vunpack.c.l.bf16 %v4284_v8  ;;  %v4271_v24 = vunpack.c.h.bf16 %v4284_v8 }
 0x229   : > { %v4266_v26 = vunpack.c.l.bf16 %v4283_v51 }
 0x22a   : > { %4806 = vmatprep.mubr.msk.bf16.mxu0 %vm720_vm3, %v3151_v29  ;;  %4826 = vmatprep.mubr.msk.bf16.mxu1 %vm3602_vm8, %v3577_v35 }
 0x22b   : > { %4807 = vmatmul.mubr.msk.bf16.gmra.mrb[28].mxu0 %vm720_vm3, %v3152_v6 }
 0x22c   : > { %4827 = vmatmul.mubr.msk.bf16.gmra.mrb[28].mxu1 %vm3602_vm8, %v3578_v55 }
 0x2e6   : > { %v4796_v44 = vpop.f32.mrb[16].mxu0 }
 0x2e7   : > { %v3231_v17 = vadd.f32 %v4796_v44, %v6323_v12  ;;  %v3222_v59 = vpop.f32.mrb[17].mxu0  ;;  %v6327_v2 = vpop.f32.mrb[16].mxu1  ;;  %v4267_v44 = vunpack.c.h.bf16 %v4283_v51 }
 0x2e8   : > { %v3223_v54 = vadd.f32 %v6323_v12, %v3222_v59  ;;  %v4797_v4 = vpop.f32.mrb[18].mxu0  ;;  %v6332_v36 = vpop.f32.mrb[17].mxu1 }
 0x2e9   : > { %v3234_v27 = vadd.f32 %v4797_v4, %v6323_v12  ;;  %v3225_v37 = vpop.f32.mrb[19].mxu0  ;;  %v6330_v45 = vadd.f32 %v4254_v40, %v3231_v17  ;;  %v6338_v1 = vpop.f32.mrb[18].mxu1  ;;  %v4285_v4 = vld [vmem:[%s6316_s14 + $0x30] sm:$0xff]  }
 0x2ea   : > { %v3226_v42 = vadd.f32 %v6323_v12, %v3225_v37  ;;  %v6335_v62 = vadd.f32 %v4250_v38, %v3223_v54  ;;  %v6344_v3 = vpop.f32.mrb[19].mxu1  ;;  %v4286_v37 = vld [vmem:[%s6316_s14 + $0x38] sm:$0xff]  }
 0x2eb   : > { %v3339_v9 = vsel %vm720_vm3, %v6330_v45, -inf  ;;  %v6342_v10 = vadd.f32 %v4255_v49, %v3234_v27  ;;  %v4278_v61 = vunpack.c.l.bf16 %v4286_v37 }
 0x2ec   : > { %3340 = vmax.xlane.f32.xlu1 %v3339_v9  ;;  %v3333_v28 = vsel %vm720_vm3, %v6335_v62, -inf  ;;  %v6348_v11 = vadd.f32 %v4251_v60, %v3226_v42 }
 0x2ed   : > { %3334 = vmax.xlane.f32.xlu0 %v3333_v28  ;;  %v3342_v25 = vsel %vm720_vm3, %v6342_v10, -inf  ;;  %v4274_v28 = vunpack.c.l.bf16 %v4285_v4 }
 0x2ee   : > { %v4800_v5 = vpop.f32.mrb[20].mxu0  ;;  %v3336_v43 = vsel %vm720_vm3, %v6348_v11, -inf }
 0x2ef   : > { %v3247_v63 = vadd.f32 %v4800_v5, %v6323_v12  ;;  %v3238_v30 = vpop.f32.mrb[21].mxu0  ;;  %v6357_v52 = vpop.f32.mrb[20].mxu1 }
 0x2f0   : > { %v3239_v21 = vadd.f32 %v6323_v12, %v3238_v30  ;;  %3343 = vmax.xlane.f32.xlu1 %v3342_v25  ;;  %v4801_v15 = vpop.f32.mrb[22].mxu0  ;;  %v6362_v23 = vpop.f32.mrb[21].mxu1 }
 0x2f1   : > { %v3250_v13 = vadd.f32 %v4801_v15, %v6323_v12  ;;  %v3241_v34 = vpop.f32.mrb[23].mxu0  ;;  %3337 = vmax.xlane.f32.xlu0 %v3336_v43  ;;  %v6360_v22 = vadd.f32 %v4262_v14, %v3247_v63  ;;  %v6366_v16 = vpop.f32.mrb[22].mxu1 }
 0x2f2   : > { %v3242_v33 = vadd.f32 %v6323_v12, %v3241_v34  ;;  %v6372_v50 = vpop.f32.mrb[23].mxu1  ;;  %v6374_v58 = vadd.f32 %v4258_v18, %v3239_v21 }
 0x2f3   : > { %v3351_v20 = vsel %vm720_vm3, %v6360_v22, -inf  ;;  %v6370_v41 = vadd.f32 %v4263_v7, %v3250_v13  ;;  %v4275_v7 = vunpack.c.h.bf16 %v4285_v4 }
 0x2f4   : > { %v6378_v47 = vadd.f32 %v4259_v31, %v3242_v33  ;;  %v3345_v29 = vsel %vm720_vm3, %v6374_v58, -inf  ;;  %v4279_v33 = vunpack.c.h.bf16 %v4286_v37 }
 0x2f5   : > { %3352 = vmax.xlane.f32.xlu0 %v3351_v20  ;;  %v3354_v46 = vsel %vm720_vm3, %v6370_v41, -inf }
 0x2f6   : > { %3355 = vmax.xlane.f32.xlu1 %v3354_v46  ;;  %v4804_v53 = vpop.f32.mrb[24].mxu0  ;;  %v3348_v32 = vsel %vm720_vm3, %v6378_v47, -inf }
 0x2f7   : > { %v3263_v19 = vadd.f32 %v4804_v53, %v6323_v12  ;;  %v3254_v57 = vpop.f32.mrb[25].mxu0  ;;  %v6385_v55 = vpop.f32.mrb[24].mxu1 }
 0x2f8   : > { %v3255_v6 = vadd.f32 %v6323_v12, %v3254_v57  ;;  %v4805_v56 = vpop.f32.mrb[26].mxu0  ;;  %v6392_v38 = vpop.f32.mrb[25].mxu1 }
 0x2f9   : > { %v3266_v35 = vadd.f32 %v4805_v56, %v6323_v12  ;;  %v3257_v39 = vpop.f32.mrb[27].mxu0  ;;  %3346 = vmax.xlane.f32.xlu0 %v3345_v29  ;;  %v6390_v40 = vadd.f32 %v4270_v48, %v3263_v19  ;;  %v6395_v59 = vpop.f32.mrb[26].mxu1 }
 0x2fa   : > { %v3258_v17 = vadd.f32 %v6323_v12, %v3257_v39  ;;  %3349 = vmax.xlane.f32.xlu1 %v3348_v32  ;;  %v6402_v60 = vpop.f32.mrb[27].mxu1  ;;  %v6404_v27 = vadd.f32 %v4266_v26, %v3255_v6 }
 0x2fb   : > { %v3363_v49 = vsel %vm720_vm3, %v6390_v40, -inf  ;;  %v6399_v54 = vadd.f32 %v4271_v24, %v3266_v35 }
 0x2fc   : > { %v6409_v0 = vadd.f32 %v4267_v44, %v3258_v17  ;;  %v3357_v25 = vsel %vm720_vm3, %v6404_v27, -inf }
 0x2fd   : > { %3364 = vmax.xlane.f32.xlu0 %v3363_v49  ;;  %v3366_v42 = vsel %vm720_vm3, %v6399_v54, -inf }
 0x2fe   : > { %3367 = vmax.xlane.f32.xlu1 %v3366_v42  ;;  %v4808_v9 = vpop.f32.mrb[28].mxu0  ;;  %v3360_v43 = vsel %vm720_vm3, %v6409_v0, -inf }
 0x2ff   : > { %v3270_v14 = vpop.f32.mrb[29].mxu0  ;;  %v3279_v5 = vadd.f32 %v4808_v9, %v6323_v12  ;;  %v6415_v21 = vpop.f32.mrb[28].mxu1 }
 0x300   : > { %v3271_v63 = vadd.f32 %v6323_v12, %v3270_v14  ;;  %v4809_v30 = vpop.f32.mrb[30].mxu0  ;;  %v6419_v18 = vpop.f32.mrb[29].mxu1 }
 0x301   : > { %3358 = vmax.xlane.f32.xlu0 %v3357_v25  ;;  %v3273_v15 = vpop.f32.mrb[31].mxu0  ;;  %v3282_v13 = vadd.f32 %v4809_v30, %v6323_v12  ;;  %v6425_v8 = vpop.f32.mrb[30].mxu1  ;;  %v6433_v51 = vadd.f32 %v4278_v61, %v3279_v5 }
 0x302   : > { %v3274_v34 = vadd.f32 %v6323_v12, %v3273_v15  ;;  %3361 = vmax.xlane.f32.xlu1 %v3360_v43  ;;  %v6423_v31 = vadd.f32 %v4274_v28, %v3271_v63  ;;  %v6427_v20 = vpop.f32.mrb[31].mxu1 }
 0x303   : > { %v6437_v12 = vadd.f32 %v4279_v33, %v3282_v13  ;;  %v3375_v19 = vsel %vm720_vm3, %v6433_v51, -inf }
 0x304   : > { %v3369_v46 = vsel %vm720_vm3, %v6423_v31, -inf  ;;  %v6431_v48 = vadd.f32 %v4275_v7, %v3274_v34 }
 0x305   : > { %3370 = vmax.xlane.f32.xlu0 %v3369_v46  ;;  %v3378_v57 = vsel %vm720_vm3, %v6437_v12, -inf }
 0x306   : > { %v3372_v53 = vsel %vm720_vm3, %v6431_v48, -inf }
 0x307   : > { %3373 = vmax.xlane.f32.xlu1 %v3372_v53 }
 0x309   : > { %3376 = vmax.xlane.f32.xlu0 %v3375_v19 }
 0x30b   : > { %3379 = vmax.xlane.f32.xlu1 %v3378_v57 }
 0x379   : > { %v3341_v24 = vpop.xlane.xlu1 %3340 }
 0x37a   : > { %v3383_v6 = vsub.f32 %v6330_v45, %v3341_v24  ;;  %v3335_v56 = vpop.xlane.xlu0 %3334 }
 0x37b   : > { %v3381_v29 = vsub.f32 %v6335_v62, %v3335_v56 }
 0x37c   : > { %v3401_v26 = vmul.f32 1.442695, %v3383_v6 }
 0x37d   : > { %v3397_v35 = vmul.f32 1.442695, %v3381_v29  ;;  %v3344_v39 = vpop.xlane.xlu1 %3343 }
 0x37e   : > { %5189 = vpow2.f32 %v3401_v26  ;;  %v3384_v32 = vsub.f32 %v6342_v10, %v3344_v39  ;;  %v3338_v44 = vpop.xlane.xlu0 %3337 }
 0x37f   : > { %v3382_v17 = vsub.f32 %v6348_v11, %v3338_v44  ;;  %5191 = vpow2.f32 %v3397_v35 }
 0x380   : > { %v3403_v49 = vmul.f32 1.442695, %v3384_v32 }
 0x381   : > { %v3399_v4 = vmul.f32 1.442695, %v3382_v17 }
 0x382   : > { %5193 = vpow2.f32 %v3403_v49  ;;  %v3353_v37 = vpop.xlane.xlu0 %3352 }
 0x383   : > { %v3387_v42 = vsub.f32 %v6360_v22, %v3353_v37  ;;  %v3356_v45 = vpop.xlane.xlu1 %3355  ;;  %5195 = vpow2.f32 %v3399_v4 }
 0x384   : > { %v3388_v62 = vsub.f32 %v6370_v41, %v3356_v45 }
 0x385   : > { %v3409_v9 = vmul.f32 1.442695, %v3387_v42 }
 0x386   : > { %v3411_v28 = vmul.f32 1.442695, %v3388_v62  ;;  %v3347_v14 = vpop.xlane.xlu0 %3346 }
 0x387   : > { %5197 = vpow2.f32 %v3409_v9  ;;  %v3385_v10 = vsub.f32 %v6374_v58, %v3347_v14  ;;  %v3350_v61 = vpop.xlane.xlu1 %3349 }
 0x388   : > { %v6450_v5 = vpop.eup %5189  ;;  %5199 = vpow2.f32 %v3411_v28  ;;  %v3386_v11 = vsub.f32 %v6378_v47, %v3350_v61 }
 0x389   : > { %v3405_v63 = vmul.f32 1.442695, %v3385_v10  ;;  %v3435_v22 = vsel %vm720_vm3, %v6450_v5, 0.0  ;;  %v6455_v30 = vpop.eup %5191 }
 0x38a   : > { %v3407_v25 = vmul.f32 1.442695, %v3386_v11  ;;  %v3365_v41 = vpop.xlane.xlu0 %3364  ;;  %3436 = vadd.xlane.f32.xlu0 %v3435_v22  ;;  %v3429_v34 = vsel %vm720_vm3, %v6455_v30, 0.0 }
 0x38b   : > { %5201 = vpow2.f32 %v3405_v63  ;;  %v3391_v7 = vsub.f32 %v6390_v40, %v3365_v41  ;;  %v3368_v15 = vpop.xlane.xlu1 %3367 }
 0x38c   : > { %v6458_v58 = vpop.eup %5193  ;;  %5203 = vpow2.f32 %v3407_v25  ;;  %v3392_v43 = vsub.f32 %v6399_v54, %v3368_v15 }
 0x38d   : > { %v3417_v13 = vmul.f32 1.442695, %v3391_v7  ;;  %v3438_v47 = vsel %vm720_vm3, %v6458_v58, 0.0  ;;  %v6465_v33 = vpop.eup %5195 }
 0x38e   : > { %v3419_v46 = vmul.f32 1.442695, %v3392_v43  ;;  %v3359_v53 = vpop.xlane.xlu0 %3358  ;;  %3439 = vadd.xlane.f32.xlu1 %v3438_v47  ;;  %3430 = vadd.xlane.f32.xlu0 %v3429_v34  ;;  %v3432_v6 = vsel %vm720_vm3, %v6465_v33, 0.0 }
 0x38f   : > { %5205 = vpow2.f32 %v3417_v13  ;;  %v3389_v40 = vsub.f32 %v6404_v27, %v3359_v53  ;;  %v3362_v19 = vpop.xlane.xlu1 %3361 }
 0x390   : > { %5207 = vpow2.f32 %v3419_v46  ;;  %v3390_v54 = vsub.f32 %v6409_v0, %v3362_v19 }
 0x391   : > { %v6469_v57 = vpop.eup %5197  ;;  %v3413_v24 = vmul.f32 1.442695, %v3389_v40 }
 0x392   : > { %v6473_v56 = vpop.eup %5199  ;;  %v3415_v29 = vmul.f32 1.442695, %v3390_v54  ;;  %3433 = vadd.xlane.f32.xlu1 %v3432_v6  ;;  %v3371_v26 = vpop.xlane.xlu0 %3370  ;;  %v3447_v35 = vsel %vm720_vm3, %v6469_v57, 0.0  ;;  %v6526_v54 = vld [vmem:[%s6677_s11] ss:$0 sm:$0xff] }
 0x393   : > { %5209 = vpow2.f32 %v3413_v24  ;;  %v3393_v27 = vsub.f32 %v6423_v31, %v3371_v26  ;;  %3448 = vadd.xlane.f32.xlu0 %v3447_v35  ;;  %v3450_v17 = vsel %vm720_vm3, %v6473_v56, 0.0 }
 0x394   : > { %5211 = vpow2.f32 %v3415_v29  ;;  %v3374_v0 = vpop.xlane.xlu1 %3373  ;;  %v3670_v29 = vadd.f32 %v6327_v2, %v6526_v54  ;;  %v3662_v2 = vadd.f32 %v6526_v54, %v6332_v36  ;;  %v3686_v36 = vadd.f32 %v6357_v52, %v6526_v54 }
 0x395   : > { %v6478_v39 = vpop.eup %5201  ;;  %v3421_v32 = vmul.f32 1.442695, %v3393_v27  ;;  %v3394_v44 = vsub.f32 %v6431_v48, %v3374_v0 }
 0x396   : > { %v6483_v49 = vpop.eup %5203  ;;  %3451 = vadd.xlane.f32.xlu1 %v3450_v17  ;;  %v3377_v4 = vpop.xlane.xlu0 %3376  ;;  %v3441_v37 = vsel %vm720_vm3, %v6478_v39, 0.0  ;;  %v3673_v17 = vadd.f32 %v6338_v1, %v6526_v54  ;;  %v3665_v1 = vadd.f32 %v6526_v54, %v6344_v3 }
 0x397   : > { %5213 = vpow2.f32 %v3421_v32  ;;  %v3423_v31 = vmul.f32 1.442695, %v3394_v44  ;;  %v3395_v42 = vsub.f32 %v6433_v51, %v3377_v4  ;;  %3442 = vadd.xlane.f32.xlu0 %v3441_v37  ;;  %v3444_v28 = vsel %vm720_vm3, %v6483_v49, 0.0 }
 0x398   : > { %v3380_v45 = vpop.xlane.xlu1 %3379 }
 0x399   : > { %v6488_v62 = vpop.eup %5205  ;;  %5215 = vpow2.f32 %v3423_v31  ;;  %v3425_v48 = vmul.f32 1.442695, %v3395_v42  ;;  %v3396_v9 = vsub.f32 %v6437_v12, %v3380_v45 }
 0x39a   : > { %v6493_v14 = vpop.eup %5207  ;;  %3445 = vadd.xlane.f32.xlu1 %v3444_v28  ;;  %v3459_v10 = vsel %vm720_vm3, %v6488_v62, 0.0 }
 0x39b   : > { %5217 = vpow2.f32 %v3425_v48  ;;  %v3427_v61 = vmul.f32 1.442695, %v3396_v9  ;;  %3460 = vadd.xlane.f32.xlu0 %v3459_v10  ;;  %v3462_v11 = vsel %vm720_vm3, %v6493_v14, 0.0 }
 0x39d   : > { %v6497_v51 = vpop.eup %5209  ;;  %5219 = vpow2.f32 %v3427_v61 }
 0x39e   : > { %v6501_v63 = vpop.eup %5211  ;;  %3463 = vadd.xlane.f32.xlu1 %v3462_v11  ;;  %v3453_v12 = vsel %vm720_vm3, %v6497_v51, 0.0 }
 0x39f   : > { %3454 = vadd.xlane.f32.xlu0 %v3453_v12  ;;  %v3456_v25 = vsel %vm720_vm3, %v6501_v63, 0.0 }
 0x3a1   : > { %v6505_v22 = vpop.eup %5213 }
 0x3a2   : > { %3457 = vadd.xlane.f32.xlu1 %v3456_v25  ;;  %v3465_v41 = vsel %vm720_vm3, %v6505_v22, 0.0 }
 0x3a3   : > { %v6511_v7 = vpop.eup %5215  ;;  %3466 = vadd.xlane.f32.xlu0 %v3465_v41 }
 0x3a4   : > { %v3468_v15 = vsel %vm720_vm3, %v6511_v7, 0.0 }
 0x3a5   : > { %v6515_v43 = vpop.eup %5217 }
 0x3a6   : > { %3469 = vadd.xlane.f32.xlu1 %v3468_v15  ;;  %v3471_v13 = vsel %vm720_vm3, %v6515_v43, 0.0 }
 0x3a7   : > { %v6519_v47 = vpop.eup %5219  ;;  %3472 = vadd.xlane.f32.xlu0 %v3471_v13  ;;  %v3689_v13 = vadd.f32 %v6366_v16, %v6526_v54 }
 0x3a8   : > { %v3474_v34 = vsel %vm720_vm3, %v6519_v47, 0.0 }
 0x3aa   : > { %3475 = vadd.xlane.f32.xlu1 %v3474_v34 }
 0x417   : > { %v3437_v46 = vpop.xlane.xlu0 %3436 }
 0x418   : > { %5221 = vrcp.f32 %v3437_v46  ;;  %v3678_v46 = vadd.f32 %v6526_v54, %v6362_v23 }
 0x41b   : > { %v3440_v53 = vpop.xlane.xlu1 %3439  ;;  %v3431_v40 = vpop.xlane.xlu0 %3430 }
 0x41c   : > { %5223 = vrcp.f32 %v3440_v53 }
 0x41d   : > { %5225 = vrcp.f32 %v3431_v40 }
 0x41f   : > { %v3434_v19 = vpop.xlane.xlu1 %3433 }
 0x420   : > { %5227 = vrcp.f32 %v3434_v19  ;;  %v3449_v24 = vpop.xlane.xlu0 %3448 }
 0x421   : > { %5229 = vrcp.f32 %v3449_v24 }
 0x422   : > { %v5222_v6 = vpop.eup %5221 }
 0x423   : > { %v3452_v26 = vpop.xlane.xlu1 %3451  ;;  %v3495_v35 = vmul.f32 %v5222_v6, %v6450_v5 }
 0x424   : > { %5231 = vrcp.f32 %v3452_v26  ;;  %v3443_v27 = vpop.xlane.xlu0 %3442 }
 0x425   : > { %5233 = vrcp.f32 %v3443_v27  ;;  %v3726_v0 = vmul.f32 %v3670_v29, %v3495_v35  ;;  %v3681_v29 = vadd.f32 %v6526_v54, %v6372_v50  ;;  %v3702_v35 = vadd.f32 %v6385_v55, %v6526_v54 }
 0x426   : > { %v5224_v32 = vpop.eup %5223 }
 0x427   : > { %v5226_v44 = vpop.eup %5225  ;;  %v3446_v4 = vpop.xlane.xlu1 %3445  ;;  %v3746_v37 = vsel %vm720_vm3, %v3726_v0, 0.0  ;;  %v3496_v31 = vmul.f32 %v5224_v32, %v6458_v58 }
 0x428   : > { %5235 = vrcp.f32 %v3446_v4  ;;  %3747 = vadd.xlane.f32.xlu0 %v3746_v37  ;;  %v3461_v5 = vpop.xlane.xlu0 %3460  ;;  %v3493_v42 = vmul.f32 %v5226_v44, %v6455_v30  ;;  %v3705_v4 = vadd.f32 %v6395_v59, %v6526_v54  ;;  %v3697_v59 = vadd.f32 %v6526_v54, %v6402_v60 }
 0x429   : > { %5237 = vrcp.f32 %v3461_v5  ;;  %v3727_v45 = vmul.f32 %v3673_v17, %v3496_v31  ;;  %v3694_v31 = vadd.f32 %v6526_v54, %v6392_v38  ;;  %v3710_v38 = vadd.f32 %v6526_v54, %v6419_v18 }
 0x42a   : > { %v5228_v48 = vpop.eup %5227  ;;  %v3724_v9 = vmul.f32 %v3662_v2, %v3493_v42  ;;  %v3713_v60 = vadd.f32 %v6526_v54, %v6427_v20  ;;  %v3718_v18 = vadd.f32 %v6415_v21, %v6526_v54 }
 0x42b   : > { %v5230_v28 = vpop.eup %5229  ;;  %v3464_v10 = vpop.xlane.xlu1 %3463  ;;  %v3749_v61 = vsel %vm720_vm3, %v3727_v45, 0.0  ;;  %v3494_v58 = vmul.f32 %v5228_v48, %v6465_v33 }
 0x42c   : > { %5239 = vrcp.f32 %v3464_v10  ;;  %3750 = vadd.xlane.f32.xlu1 %v3749_v61  ;;  %v3740_v30 = vsel %vm720_vm3, %v3724_v9, 0.0  ;;  %v3455_v11 = vpop.xlane.xlu0 %3454  ;;  %v3499_v12 = vmul.f32 %v5230_v28, %v6469_v57 }
 0x42d   : > { %3741 = vadd.xlane.f32.xlu0 %v3740_v30  ;;  %5241 = vrcp.f32 %v3455_v11  ;;  %v3725_v25 = vmul.f32 %v3665_v1, %v3494_v58 }
 0x42e   : > { %v5232_v41 = vpop.eup %5231  ;;  %v3730_v3 = vmul.f32 %v3686_v36, %v3499_v12 }
 0x42f   : > { %v5234_v15 = vpop.eup %5233  ;;  %v3458_v33 = vpop.xlane.xlu1 %3457  ;;  %v3743_v34 = vsel %vm720_vm3, %v3725_v25, 0.0  ;;  %v3500_v52 = vmul.f32 %v5232_v41, %v6473_v56  ;;  %v3721_v41 = vadd.f32 %v6425_v8, %v6526_v54 }
 0x430   : > { %5243 = vrcp.f32 %v3458_v33  ;;  %3744 = vadd.xlane.f32.xlu1 %v3743_v34  ;;  %v3467_v57 = vpop.xlane.xlu0 %3466  ;;  %v3758_v53 = vsel %vm720_vm3, %v3730_v3, 0.0  ;;  %v3497_v40 = vmul.f32 %v5234_v15, %v6478_v39  ;;  %v3804_v34 = vlaneseq }
 0x431   : > { %5245 = vrcp.f32 %v3467_v57  ;;  %3759 = vadd.xlane.f32.xlu0 %v3758_v53  ;;  %v3731_v19 = vmul.f32 %v3689_v13, %v3500_v52 }
 0x432   : > { %v5236_v24 = vpop.eup %5235  ;;  %v3728_v16 = vmul.f32 %v3678_v46, %v3497_v40  ;;  %v3805_v57 = vand.u32 127, %v3804_v34  ;;  %v3807_v40 = vshrl.u32 %v3804_v34, 7 }
 0x433   : > { %v5238_v6 = vpop.eup %5237  ;;  %v3470_v56 = vpop.xlane.xlu1 %3469  ;;  %v3761_v26 = vsel %vm720_vm3, %v3731_v19, 0.0  ;;  %v3498_v23 = vmul.f32 %v5236_v24, %v6483_v49 }
 0x434   : > { %5247 = vrcp.f32 %v3470_v56  ;;  %3762 = vadd.xlane.f32.xlu1 %v3761_v26  ;;  %v3473_v39 = vpop.xlane.xlu0 %3472  ;;  %v3752_v27 = vsel %vm720_vm3, %v3728_v16, 0.0  ;;  %v3503_v0 = vmul.f32 %v5238_v6, %v6488_v62  ;;  %v3810_v54 = vadd.s32 4294967288, %v3805_v57 }
 0x435   : > { %5249 = vrcp.f32 %v3473_v39  ;;  %3753 = vadd.xlane.f32.xlu0 %v3752_v27  ;;  %v3729_v32 = vmul.f32 %v3681_v29, %v3498_v23  ;;  %v3808_v16 = vsub.s32 %v3805_v57, %v3807_v40 }
 0x436   : > { %v5240_v44 = vpop.eup %5239  ;;  %v3734_v50 = vmul.f32 %v3702_v35, %v3503_v0  ;;  %v3813_v19 = vsub.s32 %v3810_v54, %v3807_v40 }
 0x437   : > { %v5242_v17 = vpop.eup %5241  ;;  %v3476_v49 = vpop.xlane.xlu1 %3475  ;;  %v3755_v37 = vsel %vm720_vm3, %v3729_v32, 0.0  ;;  %v3504_v55 = vmul.f32 %v5240_v44, %v6493_v14 }
 0x438   : > { %5251 = vrcp.f32 %v3476_v49  ;;  %3756 = vadd.xlane.f32.xlu1 %v3755_v37  ;;  %v3770_v62 = vsel %vm720_vm3, %v3734_v50, 0.0  ;;  %v3501_v2 = vmul.f32 %v5242_v17, %v6497_v51 }
 0x439   : > { %3771 = vadd.xlane.f32.xlu0 %v3770_v62  ;;  %v3735_v5 = vmul.f32 %v3705_v4, %v3504_v55 }
 0x43a   : > { %v5244_v42 = vpop.eup %5243  ;;  %v3732_v45 = vmul.f32 %v3694_v31, %v3501_v2 }
 0x43b   : > { %v5246_v48 = vpop.eup %5245  ;;  %v3773_v9 = vsel %vm720_vm3, %v3735_v5, 0.0  ;;  %v3502_v14 = vmul.f32 %v5244_v42, %v6501_v63 }
 0x43c   : > { %3774 = vadd.xlane.f32.xlu1 %v3773_v9  ;;  %v3764_v28 = vsel %vm720_vm3, %v3732_v45, 0.0  ;;  %v3505_v51 = vmul.f32 %v5246_v48, %v6505_v22 }
 0x43d   : > { %3765 = vadd.xlane.f32.xlu0 %v3764_v28  ;;  %v3733_v1 = vmul.f32 %v3697_v59, %v3502_v14 }
 0x43e   : > { %v5248_v10 = vpop.eup %5247  ;;  %v3736_v61 = vmul.f32 %v3710_v38, %v3505_v51 }
 0x43f   : > { %v5250_v58 = vpop.eup %5249  ;;  %v3767_v36 = vsel %vm720_vm3, %v3733_v1, 0.0  ;;  %v3506_v63 = vmul.f32 %v5248_v10, %v6511_v7 }
 0x440   : > { %3768 = vadd.xlane.f32.xlu1 %v3767_v36  ;;  %v3776_v30 = vsel %vm720_vm3, %v3736_v61, 0.0  ;;  %v3507_v22 = vmul.f32 %v5250_v58, %v6515_v43 }
 0x441   : > { %3777 = vadd.xlane.f32.xlu0 %v3776_v30  ;;  %v3737_v11 = vmul.f32 %v3713_v60, %v3506_v63 }
 0x442   : > { %v5252_v12 = vpop.eup %5251  ;;  %v3738_v25 = vmul.f32 %v3718_v18, %v3507_v22 }
 0x443   : > { %v3779_v20 = vsel %vm720_vm3, %v3737_v11, 0.0  ;;  %v3508_v3 = vmul.f32 %v5252_v12, %v6519_v47 }
 0x444   : > { %3780 = vadd.xlane.f32.xlu1 %v3779_v20  ;;  %v3782_v7 = vsel %vm720_vm3, %v3738_v25, 0.0 }
 0x445   : > { %3783 = vadd.xlane.f32.xlu0 %v3782_v7  ;;  %v3739_v21 = vmul.f32 %v3721_v41, %v3508_v3 }
 0x447   : > { %v3785_v15 = vsel %vm720_vm3, %v3739_v21, 0.0 }
 0x448   : > { %3786 = vadd.xlane.f32.xlu1 %v3785_v15 }
 0x4b5   : > { %v3748_v43 = vpop.xlane.xlu0 %3747 }
 0x4b6   : > { %v3820_v27 = vrot.slane %v3748_v43, %v3808_v16 }
 0x4b9   : > { %v3751_v13 = vpop.xlane.xlu1 %3750 }
 0x4ba   : > { %v3742_v33 = vpop.xlane.xlu0 %3741  ;;  %v3824_v26 = vrot.slane %v3751_v13, %v3813_v19 }
 0x4bb   : > { %v3809_v23 = vrot.slane %v3742_v33, %v3808_v16 }
 0x4bc   : > { %v3825_v50 = vsel %vm3815_vm9, %v3824_v26, %v3820_v27 }
 0x4bd   : > { %v3745_v52 = vpop.xlane.xlu1 %3744 }
 0x4be   : > { %v3760_v46 = vpop.xlane.xlu0 %3759  ;;  %v3814_v6 = vrot.slane %v3745_v52, %v3813_v19 }
 0x4bf   : > { %v3838_v31 = vrot.slane %v3760_v46, %v3808_v16 }
 0x4c0   : > { %v3816_v0 = vsel %vm3815_vm9, %v3814_v6, %v3809_v23 }
 0x4c1   : > { %v3763_v8 = vpop.xlane.xlu1 %3762  ;;  %v3881_v37 = vsel %vm3880_vm10, %v3825_v50, %v3816_v0 }
 0x4c2   : > { %v3754_v53 = vpop.xlane.xlu0 %3753  ;;  %v3842_v17 = vrot.slane %v3763_v8, %v3813_v19 }
 0x4c3   : > { %v3829_v39 = vrot.slane %v3754_v53, %v3808_v16 }
 0x4c4   : > { %v3843_v42 = vsel %vm3815_vm9, %v3842_v17, %v3838_v31 }
 0x4c5   : > { %v3757_v47 = vpop.xlane.xlu1 %3756 }
 0x4c6   : > { %v3772_v24 = vpop.xlane.xlu0 %3771  ;;  %v3833_v29 = vrot.slane %v3757_v47, %v3813_v19 }
 0x4c7   : > { %v3856_v38 = vrot.slane %v3772_v24, %v3808_v16 }
 0x4c8   : > { %v3834_v32 = vsel %vm3815_vm9, %v3833_v29, %v3829_v39 }
 0x4c9   : > { %v3775_v56 = vpop.xlane.xlu1 %3774  ;;  %v3883_v62 = vsel %vm3882_vm11, %v3834_v32, %v3881_v37 }
 0x4ca   : > { %v3766_v35 = vpop.xlane.xlu0 %3765  ;;  %v3860_v45 = vrot.slane %v3775_v56, %v3813_v19  ;;  %v3885_v59 = vsel %vm3884_vm12, %v3843_v42, %v3883_v62 }
 0x4cb   : > { %v3847_v55 = vrot.slane %v3766_v35, %v3808_v16 }
 0x4cc   : > { %v3861_v10 = vsel %vm3815_vm9, %v3860_v45, %v3856_v38 }
 0x4cd   : > { %v3769_v44 = vpop.xlane.xlu1 %3768 }
 0x4ce   : > { %v3851_v4 = vrot.slane %v3769_v44, %v3813_v19  ;;  %v3778_v49 = vpop.xlane.xlu0 %3777 }
 0x4cf   : > { %v3865_v9 = vrot.slane %v3778_v49, %v3808_v16 }
 0x4d0   : > { %v3852_v2 = vsel %vm3815_vm9, %v3851_v4, %v3847_v55 }
 0x4d1   : > { %v3781_v5 = vpop.xlane.xlu1 %3780  ;;  %v3887_v28 = vsel %vm3886_vm13, %v3852_v2, %v3885_v59 }
 0x4d2   : > { %v3869_v48 = vrot.slane %v3781_v5, %v3813_v19  ;;  %v3784_v14 = vpop.xlane.xlu0 %3783  ;;  %v3889_v60 = vsel %vm3888_vm14, %v3861_v10, %v3887_v28 }
 0x4d3   : > { %v3874_v61 = vrot.slane %v3784_v14, %v3808_v16 }
 0x4d4   : > { %v3870_v51 = vsel %vm3815_vm9, %v3869_v48, %v3865_v9 }
 0x4d5   : > { %v3787_v1 = vpop.xlane.xlu1 %3786  ;;  %v3891_v36 = vsel %vm3890_vm15, %v3870_v51, %v3889_v60 }
 0x4d6   : > { %v3878_v58 = vrot.slane %v3787_v1, %v3813_v19 }
 0x4d8   : > { %v3879_v63 = vsel %vm3815_vm9, %v3878_v58, %v3874_v61 }
 0x4d9   : > { %v3893_v18 = vsel %vm3892_vm0, %v3879_v63, %v3891_v36 }
 0x4da   : > { %3896 = vst.msk [vmem:[%s446_s18] sm:$0xff] %vm3895_vm1, %v3893_v18 }
 0x4db   : > { %5266 = shalt.err (!%p5263_p7)
}
 0x4dc   : > { %s5267_s26 = scalar_lea.hbm %s6611_s29, 128  ;;  %s5271_s18 = scalar_lea.hbm %s6678_s12, 512 }
 0x4dd   : > { %p5268_p9 = scmp.ne.s32.totalorder %s6611_s29, %s5267_s26  ;;  %p5272_p12 = scmp.lt.u32.totalorder %s6611_s29, %s6678_s12 }
 0x4de   : > { %p5273_p13 = scmp.lt.u32.totalorder %s5271_s18, %s5267_s26  ;;  %p5275_p1 = scmp.lt.u32.totalorder %s5267_s26, %s6611_s29 }
 0x4df   : > { %p5269_p10 = pnand %p5268_p9, %p5466_p3 }
 0x4e0   : > { %p5274_p0 = por %p5273_p13, %p5272_p12 }
 0x4e1   : > { %p5270_p11 = pneg %p5269_p10 }
 0x4e2   : > { %p5276_p2 = por %p5275_p1, %p5274_p0 }
 0x4e4   : > { %p5277_p4 = pnand %p5276_p2, %p5270_p11 }
 0x4e6   : > { %5280 = shalt.err (!%p5277_p4)
}
 0x4e7   : > { %5106 = dma.vmem_to_hbm [thread:$0]  (%p5466_p3), %s6613_s27, 128, %s6611_s29, %s3898_s23  }
 0x4e8 PF: > { %p5112_p5 = scmp.ge.s32.totalorder %s5347_s28, 2  ;;  %s3925_s30 = sand.u32 1, %s5319_s21  }
 0x4e9   : > { %s3926_s19 = scalar_lea.sflag [#allocation3], %s3925_s30 }
 0x4ea   : > { %p5109_p6 = pnand %p5112_p5, %p5475_p8 }
 0x4ec   : > { %5314 = dma.done.wait (!%p5109_p6), %s3926_s19, 128  }
 0x4ed   : > { %5316 = vsyncadd (!%p5109_p6), %s3926_s19, 4294967168  ;;  %s25_s28 = sadd.s32 1, %s5347_s28   ;;  %s6696_s13 = sld [smem:[#allocation5_spill]] }
 0x4ee   : > { %p22_p7 = scmp.ge.s32.totalorder %s25_s28, 6   ;;  %s6697_s23 = sld [smem:[#allocation10_spill]] }
 0x4ef   : > { %s6698_s24 = sld [smem:[#allocation6_spill]]  ;;  %s6699_s25 = sld [smem:[#allocation7_spill]] }
 0x4f0   : > { %s6700_s26 = sld [smem:[#allocation8_spill]]  ;;  %s6701_s27 = sld [smem:[#allocation9_spill]] }
 0x4f1   : > { %s6702_s21 = smov %s5323_s22  ;;  %24 = sbr.rel (!%p22_p7) target bundleno = 5 (0x5), region = 123 }
 0x4f3   : > { %s6703_s22 = smov %s6696_s13 }
 0x4f8   :  { %3931 = vsyncpa [#allocation3], 1 }
 0x4f9   :  { %3933 = vsyncpa [#allocation3 + $0x1], 1 }

</bundles_post_ra>
